<compile_context>
chip_gen: v7x
topology: tpu7x:2x2x1
jax: 0.10.0
libtpu: 0.0.40
codegen_flags: <defaults>
</compile_context>

<pallas_src>
import functools

import numpy as np

import jax
import jax.numpy as jnp
from jax.experimental import pallas as pl
from jax.experimental.pallas import tpu as pltpu


# ----------------------------------------------------------------------------
# Helpers
# ----------------------------------------------------------------------------
def _row_tile(n, max_tile=512):
    """Largest row tile <= max_tile that divides n and is a multiple of 8."""
    if n <= max_tile:
        return n
    start = max_tile - (max_tile % 8)
    for t in range(start, 7, -8):
        if n % t == 0:
            return t
    return n  # fall back to a single block (still correct)


def _block_diag(mats):
    rows = sum(m.shape[0] for m in mats)
    cols = sum(m.shape[1] for m in mats)
    out = jnp.zeros((rows, cols), jnp.float32)
    r = c = 0
    for m in mats:
        out = out.at[r:r + m.shape[0], c:c + m.shape[1]].set(m)
        r += m.shape[0]
        c += m.shape[1]
    return out


# ----------------------------------------------------------------------------
# Kernel 1: fused VAE-x / VAE-y / coefficient-bank / depth-loop forward
# ----------------------------------------------------------------------------
def _fused_forward_kernel(*refs, depth, n_extra_hidden):
    n_in = 28 + 2 * n_extra_hidden  # 4 row inputs + 20 VAE params + head params
    in_refs = refs[:n_in]
    out_refs = refs[n_in:]

    (x_ref, y_ref, epsx_ref, epsy_ref,
     vxe_w, vxe_b, vxm_w, vxm_b, vxl_w, vxl_b,
     vxd1_w, vxd1_b, vxd2_w, vxd2_b,
     vye_w, vye_b, vym_w, vym_b, vyl_w, vyl_b,
     vyd1_w, vyd1_b, vyd2_w, vyd2_b,
     hw1, hb1, *head_rest) = in_refs
    hwh = list(head_rest[0:2 * n_extra_hidden:2])
    hbh = list(head_rest[1:2 * n_extra_hidden:2])
    hwout, hbout = head_rest[-2], head_rest[-1]

    (ox_ref, zx_ref, mx_ref, varx_ref, lvx_ref,
     oy_ref, zy_ref, my_ref, vary_ref, lvy_ref, zout_ref) = out_refs

    def lin(a, w_ref, b_ref, relu=False):
        r = jnp.dot(a, w_ref[...], preferred_element_type=jnp.float32) + b_ref[...]
        return jnp.maximum(r, 0.0) if relu else r

    x = x_ref[...]

    # --- VAE-x: encode -> reparameterize -> decode (all in VMEM) ---
    hx = lin(x, vxe_w, vxe_b, relu=True)
    mean_x = lin(hx, vxm_w, vxm_b)
    log_var_x = lin(hx, vxl_w, vxl_b)
    z_x = mean_x + jnp.exp(0.5 * log_var_x) * epsx_ref[...]
    out_x = lin(lin(z_x, vxd1_w, vxd1_b, relu=True), vxd2_w, vxd2_b)

    # --- VAE-y ---
    yv = y_ref[...]
    hy = lin(yv, vye_w, vye_b, relu=True)
    mean_y = lin(hy, vym_w, vym_b)
    log_var_y = lin(hy, vyl_w, vyl_b)
    z_y = mean_y + jnp.exp(0.5 * log_var_y) * epsy_ref[...]
    out_y = lin(lin(z_y, vyd1_w, vyd1_b, relu=True), vyd2_w, vyd2_b)

    # --- all 2*depth coef/bias heads as a few wide (block-diagonal) matmuls ---
    hh = lin(x, hw1, hb1, relu=True)
    for l in range(n_extra_hidden):
        hh = lin(hh, hwh[l], hbh[l], relu=True)
    cb = lin(hh, hwout, hbout)          # (rows, 2*depth), lane-packed
    coefs = cb[:, :depth]
    biases = cb[:, depth:]

    # --- depth-unrolled residual coefficient mixing (torch forward loop) ---
    z = z_y
    for i in range(depth):
        z1 = jnp.maximum(coefs[:, i:i + 1] * z + biases[:, i:i + 1], 0.0)
        if i < depth - 1:
            z = coefs[:, i + 1:i + 2] * z1 + biases[:, i + 1:i + 2] + z

    # --- write the module outputs ---
    ox_ref[...] = out_x
    zx_ref[...] = z_x
    mx_ref[...] = mean_x
    varx_ref[...] = jnp.exp(log_var_x)
    lvx_ref[...] = log_var_x
    oy_ref[...] = out_y
    zy_ref[...] = z_y
    my_ref[...] = mean_y
    vary_ref[...] = jnp.exp(log_var_y)
    lvy_ref[...] = log_var_y
    zout_ref[...] = z


def fused_forward(params, x, y, eps_x, eps_y):
    n, dx = x.shape
    dy = y.shape[1]
    vx, vy, hd = params["vae_x"], params["vae_y"], params["heads"]
    ldx = vx["mean"][0].shape[1]
    ldy = vy["mean"][0].shape[1]
    depth = hd["Wout"].shape[1] // 2
    n_extra = len(hd["Wh"])

    rn = _row_tile(n)
    grid = (n // rn,)

    row_inputs = [x, y, eps_x, eps_y]
    weight_inputs = [
        *vx["enc1"], *vx["mean"], *vx["logvar"], *vx["dec1"], *vx["dec2"],
        *vy["enc1"], *vy["mean"], *vy["logvar"], *vy["dec1"], *vy["dec2"],
        hd["W1"], hd["b1"],
    ]
    for wh, bh in zip(hd["Wh"], hd["bh"]):
        weight_inputs += [wh, bh]
    weight_inputs += [hd["Wout"], hd["bout"]]

    in_specs = (
        [pl.BlockSpec((rn, a.shape[1]), lambda i: (i, 0)) for a in row_inputs]
        + [pl.BlockSpec(w.shape, lambda i: (0, 0)) for w in weight_inputs]
    )

    out_feats = [dx, ldx, ldx, ldx, ldx, dy, ldy, ldy, ldy, ldy, 1]
    out_shape = tuple(jax.ShapeDtypeStruct((n, f), jnp.float32) for f in out_feats)
    out_specs = [pl.BlockSpec((rn, f), lambda i: (i, 0)) for f in out_feats]

    return pl.pallas_call(
        functools.partial(_fused_forward_kernel, depth=depth,
                          n_extra_hidden=n_extra),
        out_shape=out_shape,
        grid_spec=pltpu.PrefetchScalarGridSpec(
            num_scalar_prefetch=0,
            grid=grid,
            in_specs=in_specs,
            out_specs=out_specs,
        ),
        compiler_params=pltpu.CompilerParams(
            dimension_semantics=("parallel",)),
    )(*row_inputs, *weight_inputs)


# ----------------------------------------------------------------------------
# Kernel 2: row-tiled IDW covariance + L1-normalized interpolation + y-decoder
# ----------------------------------------------------------------------------
def _idw_decode_kernel(xq_ref, xa_ref, z_ref, ls_ref, pw_ref,
                       dw1_ref, db1_ref, dw2_ref, db2_ref,
                       covar_ref, zint_ref, yhat_ref):
    ls = ls_ref[...]
    xq = xq_ref[...] / ls                  # (rn, D) scaled query rows (this tile)
    xa = xa_ref[...] / ls                  # (N, D) scaled all rows (resident)
    sq_q = jnp.sum(xq * xq, axis=1, keepdims=True)       # (rn, 1)
    sq_a = jnp.sum(xa * xa, axis=1, keepdims=True)       # (N, 1)
    gram = jax.lax.dot_general(
        xq, xa, (((1,), (1,)), ((), ())),
        preferred_element_type=jnp.float32)              # (rn, N) on the MXU
    d2 = jnp.maximum(sq_q + sq_a.T - 2.0 * gram, 0.0)

    # Zero the self-distance diagonal (train mode: query rows == data rows) so
    # the diagonal weight is the deterministic torch-equivalent 1/1e-6, instead
    # of catastrophic-cancellation noise from the Gram trick.
    rn_tile = d2.shape[0]
    rows = (jax.lax.broadcasted_iota(jnp.int32, d2.shape, 0)
            + pl.program_id(0) * rn_tile)
    cols = jax.lax.broadcasted_iota(jnp.int32, d2.shape, 1)
    d2 = jnp.where(rows == cols, 0.0, d2)

    # dist**p == d2**(p/2); clamp far below the +1e-6 floor so log(0) never
    # happens and the zeroed diagonal still yields w_ii ~= 1e6 (p >~ 0.5).
    half_p = 0.5 * pw_ref[...]                           # (1, 1) runtime power
    dpow = jnp.exp(half_p * jnp.log(jnp.maximum(d2, 1e-36)))
    w = 1.0 / (dpow + 1e-6)                              # unnormalized covar
    covar_ref[...] = w

    # w >= 0, so L1-normalizing rows AFTER the matvec is exact and removes an
    # entire (rn, N) elementwise pass plus a second live (rn, N) buffer.
    row_sum = jnp.sum(w, axis=1, keepdims=True)
    z_int = (jnp.dot(w, z_ref[...], preferred_element_type=jnp.float32)
             * pl.reciprocal(row_sum, approx=True))
    zint_ref[...] = z_int

    # Fused vae_y decoder: y_hat = dec2(relu(dec1(z_int)))
    h = jnp.maximum(
        jnp.dot(z_int, dw1_ref[...], preferred_element_type=jnp.float32)
        + db1_ref[...], 0.0)
    yhat_ref[...] = (jnp.dot(h, dw2_ref[...], preferred_element_type=jnp.float32)
                     + db2_ref[...])


def idw_decode(params, x, z):
    n, d = x.shape
    vy = params["vae_y"]
    dy = vy["dec2"][0].shape[1]
    rn = _row_tile(n)
    grid = (n // rn,)

    inputs = [x, x, z, params["lengthscale"], params["power"],
              vy["dec1"][0], vy["dec1"][1], vy["dec2"][0], vy["dec2"][1]]
    in_specs = [
        pl.BlockSpec((rn, d), lambda i: (i, 0)),          # query row tile
        pl.BlockSpec((n, d), lambda i: (0, 0)),           # all rows (resident)
        pl.BlockSpec((n, 1), lambda i: (0, 0)),           # z (resident)
        pl.BlockSpec(params["lengthscale"].shape, lambda i: (0, 0)),
        pl.BlockSpec(params["power"].shape, lambda i: (0, 0)),
        pl.BlockSpec(vy["dec1"][0].shape, lambda i: (0, 0)),
        pl.BlockSpec(vy["dec1"][1].shape, lambda i: (0, 0)),
        pl.BlockSpec(vy["dec2"][0].shape, lambda i: (0, 0)),
        pl.BlockSpec(vy["dec2"][1].shape, lambda i: (0, 0)),
    ]
    out_shape = (
        jax.ShapeDtypeStruct((n, n), jnp.float32),        # covar.evaluate()
        jax.ShapeDtypeStruct((n, 1), jnp.float32),        # z_int
        jax.ShapeDtypeStruct((n, dy), jnp.float32),       # y_hat
    )
    out_specs = [
        pl.BlockSpec((rn, n), lambda i: (i, 0)),
        pl.BlockSpec((rn, 1), lambda i: (i, 0)),
        pl.BlockSpec((rn, dy), lambda i: (i, 0)),
    ]
    return pl.pallas_call(
        _idw_decode_kernel,
        out_shape=out_shape,
        grid_spec=pltpu.PrefetchScalarGridSpec(
            num_scalar_prefetch=0,
            grid=grid,
            in_specs=in_specs,
            out_specs=out_specs,
        ),
        compiler_params=pltpu.CompilerParams(
            dimension_semantics=("parallel",)),
    )(*inputs)


# ----------------------------------------------------------------------------
# Parameter init (deterministic, torch.nn.Linear-style uniform)
# ----------------------------------------------------------------------------
def init_linear(key, fan_in, fan_out):
    kw, kb = jax.random.split(key)
    bound = 1.0 / jnp.sqrt(jnp.float32(fan_in))
    w = jax.random.uniform(kw, (fan_in, fan_out), jnp.float32, -bound, bound)
    b = jax.random.uniform(kb, (1, fan_out), jnp.float32, -bound, bound)
    return w, b


def init_vae(key, input_dim, hidden_dim, latent_dim):
    ks = jax.random.split(key, 5)
    return {
        "enc1": init_linear(ks[0], input_dim, hidden_dim),
        "mean": init_linear(ks[1], hidden_dim, latent_dim),
        "logvar": init_linear(ks[2], hidden_dim, latent_dim),
        "dec1": init_linear(ks[3], latent_dim, hidden_dim),
        "dec2": init_linear(ks[4], hidden_dim, input_dim),
    }


def init_heads(key, input_dim, hidden_dim, num_layers, depth):
    # 2*depth independent MLP heads (coef heads 0..depth-1, bias heads depth..)
    # packed ONCE at init into wide / block-diagonal matrices so the whole bank
    # runs as num_layers+1 lane-dense matmuls inside the fused kernel.
    n_heads = 2 * depth
    head_keys = jax.random.split(key, n_heads)
    w1s, b1s, wouts, bouts = [], [], [], []
    whs = [[] for _ in range(num_layers - 1)]
    bhs = [[] for _ in range(num_layers - 1)]
    for h in range(n_heads):
        ks = jax.random.split(head_keys[h], num_layers + 1)
        w, b = init_linear(ks[0], input_dim, hidden_dim)
        w1s.append(w)
        b1s.append(b)
        for l in range(num_layers - 1):
            w, b = init_linear(ks[l + 1], hidden_dim, hidden_dim)
            whs[l].append(w)
            bhs[l].append(b)
        w, b = init_linear(ks[num_layers], hidden_dim, 1)
        wouts.append(w)
        bouts.append(b)
    return {
        "W1": jnp.concatenate(w1s, axis=1),               # (D, 2*depth*H)
        "b1": jnp.concatenate(b1s, axis=1),               # (1, 2*depth*H)
        "Wh": [_block_diag(whs[l]) for l in range(num_layers - 1)],
        "bh": [jnp.concatenate(bhs[l], axis=1) for l in range(num_layers - 1)],
        "Wout": _block_diag(wouts),                       # (2*depth*H, 2*depth)
        "bout": jnp.concatenate(bouts, axis=1),           # (1, 2*depth)
    }


def init_params(key, input_dim_x, input_dim_y, hidden_dim, num_layers, depth):
    k_vx, k_vy, k_h = jax.random.split(key, 3)
    return {
        "vae_x": init_vae(k_vx, input_dim_x, 100, 3),
        "vae_y": init_vae(k_vy, input_dim_y, 100, 1),
        "heads": init_heads(k_h, input_dim_x, hidden_dim, num_layers, depth),
        "lengthscale": jnp.ones((1, input_dim_x), jnp.float32),
        "power": jnp.full((1, 1), 2.0, jnp.float32),
    }


# ----------------------------------------------------------------------------
# Forward pass (two pallas_calls, no other per-row work in JAX)
# ----------------------------------------------------------------------------
def deep_idw_forward(params, x, y, eps_x, eps_y):
    (out_x, z_x, mean_x, var_x, log_var_x,
     out_y, z_y, mean_y, var_y, log_var_y, z) = fused_forward(
        params, x, y, eps_x, eps_y)
    covar, z_int, y_hat = idw_decode(params, x, z)
    return (
        y_hat,
        z_int[:, 0],
        covar,
        z[:, 0],
        out_x, z_x, mean_x, var_x, log_var_x,
        out_y, z_y, mean_y, var_y, log_var_y,
    )


# ----------------------------------------------------------------------------
# Pure-JAX reference (torch-style math) for correctness checking
# ----------------------------------------------------------------------------
def _ref_forward(params, x, y, eps_x, eps_y):
    def lin(a, wb, relu=False):
        w, b = wb
        r = jnp.dot(a, w) + b
        return jnp.maximum(r, 0.0) if relu else r

    vx, vy, hd = params["vae_x"], params["vae_y"], params["heads"]
    hx = lin(x, vx["enc1"], True)
    mean_x = lin(hx, vx["mean"])
    log_var_x = lin(hx, vx["logvar"])
    z_x = mean_x + jnp.exp(0.5 * log_var_x) * eps_x
    out_x = lin(lin(z_x, vx["dec1"], True), vx["dec2"])

    hy = lin(y, vy["enc1"], True)
    mean_y = lin(hy, vy["mean"])
    log_var_y = lin(hy, vy["logvar"])
    z_y = mean_y + jnp.exp(0.5 * log_var_y) * eps_y
    out_y = lin(lin(z_y, vy["dec1"], True), vy["dec2"])

    hh = jnp.maximum(jnp.dot(x, hd["W1"]) + hd["b1"], 0.0)
    for wh, bh in zip(hd["Wh"], hd["bh"]):
        hh = jnp.maximum(jnp.dot(hh, wh) + bh, 0.0)
    cb = jnp.dot(hh, hd["Wout"]) + hd["bout"]
    depth = cb.shape[1] // 2
    coefs, biases = cb[:, :depth], cb[:, depth:]

    z = z_y
    for i in range(depth):
        z1 = jnp.maximum(coefs[:, i:i + 1] * z + biases[:, i:i + 1], 0.0)
        if i < depth - 1:
            z = coefs[:, i + 1:i + 2] * z1 + biases[:, i + 1:i + 2] + z

    xs = x / params["lengthscale"]
    sq = jnp.sum(xs * xs, axis=1, keepdims=True)
    d2 = jnp.maximum(sq + sq.T - 2.0 * jnp.dot(xs, xs.T), 0.0)
    eye = jnp.eye(x.shape[0], dtype=bool)
    d2 = jnp.where(eye, 0.0, d2)                  # same self-distance handling
    dist = jnp.sqrt(d2)
    w = 1.0 / (jnp.power(dist, params["power"]) + 1e-6)
    norm = jnp.sum(jnp.abs(w), axis=1, keepdims=True)
    z_int = jnp.dot(w / norm, z)
    y_hat = lin(lin(z_int, vy["dec1"], True), vy["dec2"])
    return (y_hat, z_int[:, 0], w, z[:, 0], out_x, z_x, mean_x, log_var_x,
            out_y, z_y, mean_y, log_var_y)


# ----------------------------------------------------------------------------
if __name__ == "__main__":
    N, D = 16, 4
    hidden_dim, num_layers, depth = 32, 2, 3

    key = jax.random.PRNGKey(0)
    k_x, k_y, k_ex, k_ey, k_p = jax.random.split(key, 5)
    x = jax.random.normal(k_x, (N, D), jnp.float32)
    y = jax.random.normal(k_y, (N, 1), jnp.float32)
    eps_x = jax.random.normal(k_ex, (N, 3), jnp.float32)   # latent_dim_x = 3
    eps_y = jax.random.normal(k_ey, (N, 1), jnp.float32)   # latent_dim_y = 1

    params = init_params(k_p, D, 1, hidden_dim, num_layers, depth)

    fwd = jax.jit(deep_idw_forward)
    outs = fwd(params, x, y, eps_x, eps_y)
    jax.block_until_ready(outs)

    (y_hat, z_int, covar, z,
     out_x, z_x, mean_x, var_x, log_var_x,
     out_y, z_y, mean_y, var_y, log_var_y) = outs

    # shape sanity
    assert y_hat.shape == (N, 1)
    assert z_int.shape == (N,)
    assert covar.shape == (N, N)
    assert z.shape == (N,)
    assert out_x.shape == (N, D) and out_y.shape == (N, 1)

    # pure-JAX reference check
    ref = _ref_forward(params, x, y, eps_x, eps_y)
    got = [y_hat, z_int, covar, z, out_x, z_x, mean_x, log_var_x,
           out_y, z_y, mean_y, log_var_y]
    names = ["y_hat", "z_int", "covar", "z", "output_x", "z_x", "mean_x",
             "log_var_x", "output_y", "z_y", "mean_y", "log_var_y"]
    for name, a, b in zip(names, got, ref):
        np.testing.assert_allclose(np.asarray(a), np.asarray(b),
                                   rtol=2e-2, atol=2e-3, err_msg=name)

    print("KERNEL_OK")
</pallas_src>

<mosaic_0001>
module attributes {stable_mosaic.version = 11 : i64} {
  func.func @_fused_forward_kernel(%arg0: i32, %arg1: memref<16x4xf32, #tpu.memory_space<vmem>>, %arg2: memref<16x1xf32, #tpu.memory_space<vmem>>, %arg3: memref<16x3xf32, #tpu.memory_space<vmem>>, %arg4: memref<16x1xf32, #tpu.memory_space<vmem>>, %arg5: memref<4x100xf32, #tpu.memory_space<vmem>>, %arg6: memref<1x100xf32, #tpu.memory_space<vmem>>, %arg7: memref<100x3xf32, #tpu.memory_space<vmem>>, %arg8: memref<1x3xf32, #tpu.memory_space<vmem>>, %arg9: memref<100x3xf32, #tpu.memory_space<vmem>>, %arg10: memref<1x3xf32, #tpu.memory_space<vmem>>, %arg11: memref<3x100xf32, #tpu.memory_space<vmem>>, %arg12: memref<1x100xf32, #tpu.memory_space<vmem>>, %arg13: memref<100x4xf32, #tpu.memory_space<vmem>>, %arg14: memref<1x4xf32, #tpu.memory_space<vmem>>, %arg15: memref<1x100xf32, #tpu.memory_space<vmem>>, %arg16: memref<1x100xf32, #tpu.memory_space<vmem>>, %arg17: memref<100x1xf32, #tpu.memory_space<vmem>>, %arg18: memref<1x1xf32, #tpu.memory_space<vmem>>, %arg19: memref<100x1xf32, #tpu.memory_space<vmem>>, %arg20: memref<1x1xf32, #tpu.memory_space<vmem>>, %arg21: memref<1x100xf32, #tpu.memory_space<vmem>>, %arg22: memref<1x100xf32, #tpu.memory_space<vmem>>, %arg23: memref<100x1xf32, #tpu.memory_space<vmem>>, %arg24: memref<1x1xf32, #tpu.memory_space<vmem>>, %arg25: memref<4x192xf32, #tpu.memory_space<vmem>>, %arg26: memref<1x192xf32, #tpu.memory_space<vmem>>, %arg27: memref<192x192xf32, #tpu.memory_space<vmem>>, %arg28: memref<1x192xf32, #tpu.memory_space<vmem>>, %arg29: memref<192x6xf32, #tpu.memory_space<vmem>>, %arg30: memref<1x6xf32, #tpu.memory_space<vmem>>, %arg31: memref<16x4xf32, #tpu.memory_space<vmem>>, %arg32: memref<16x3xf32, #tpu.memory_space<vmem>>, %arg33: memref<16x3xf32, #tpu.memory_space<vmem>>, %arg34: memref<16x3xf32, #tpu.memory_space<vmem>>, %arg35: memref<16x3xf32, #tpu.memory_space<vmem>>, %arg36: memref<16x1xf32, #tpu.memory_space<vmem>>, %arg37: memref<16x1xf32, #tpu.memory_space<vmem>>, %arg38: memref<16x1xf32, #tpu.memory_space<vmem>>, %arg39: memref<16x1xf32, #tpu.memory_space<vmem>>, %arg40: memref<16x1xf32, #tpu.memory_space<vmem>>, %arg41: memref<16x1xf32, #tpu.memory_space<vmem>>) attributes {dimension_semantics = [#tpu.dimension_semantics<parallel>], iteration_bounds = array<i64: 1>, scalar_prefetch = 0 : i64, scratch_operands = 0 : i64, tpu.core_type = #tpu.core_type<tc>, window_params = [{transform_indices = @transform_0, window_bounds = array<i64: 16, 4>}, {transform_indices = @transform_1, window_bounds = array<i64: 16, 1>}, {transform_indices = @transform_2, window_bounds = array<i64: 16, 3>}, {transform_indices = @transform_3, window_bounds = array<i64: 16, 1>}, {pipeline_mode = #tpu.pipeline_mode<synchronous>, transform_indices = @transform_4, window_bounds = array<i64: 4, 100>}, {pipeline_mode = #tpu.pipeline_mode<synchronous>, transform_indices = @transform_5, window_bounds = array<i64: 1, 100>}, {pipeline_mode = #tpu.pipeline_mode<synchronous>, transform_indices = @transform_6, window_bounds = array<i64: 100, 3>}, {pipeline_mode = #tpu.pipeline_mode<synchronous>, transform_indices = @transform_7, window_bounds = array<i64: 1, 3>}, {pipeline_mode = #tpu.pipeline_mode<synchronous>, transform_indices = @transform_8, window_bounds = array<i64: 100, 3>}, {pipeline_mode = #tpu.pipeline_mode<synchronous>, transform_indices = @transform_9, window_bounds = array<i64: 1, 3>}, {pipeline_mode = #tpu.pipeline_mode<synchronous>, transform_indices = @transform_10, window_bounds = array<i64: 3, 100>}, {pipeline_mode = #tpu.pipeline_mode<synchronous>, transform_indices = @transform_11, window_bounds = array<i64: 1, 100>}, {pipeline_mode = #tpu.pipeline_mode<synchronous>, transform_indices = @transform_12, window_bounds = array<i64: 100, 4>}, {pipeline_mode = #tpu.pipeline_mode<synchronous>, transform_indices = @transform_13, window_bounds = array<i64: 1, 4>}, {pipeline_mode = #tpu.pipeline_mode<synchronous>, transform_indices = @transform_14, window_bounds = array<i64: 1, 100>}, {pipeline_mode = #tpu.pipeline_mode<synchronous>, transform_indices = @transform_15, window_bounds = array<i64: 1, 100>}, {pipeline_mode = #tpu.pipeline_mode<synchronous>, transform_indices = @transform_16, window_bounds = array<i64: 100, 1>}, {pipeline_mode = #tpu.pipeline_mode<synchronous>, transform_indices = @transform_17, window_bounds = array<i64: 1, 1>}, {pipeline_mode = #tpu.pipeline_mode<synchronous>, transform_indices = @transform_18, window_bounds = array<i64: 100, 1>}, {pipeline_mode = #tpu.pipeline_mode<synchronous>, transform_indices = @transform_19, window_bounds = array<i64: 1, 1>}, {pipeline_mode = #tpu.pipeline_mode<synchronous>, transform_indices = @transform_20, window_bounds = array<i64: 1, 100>}, {pipeline_mode = #tpu.pipeline_mode<synchronous>, transform_indices = @transform_21, window_bounds = array<i64: 1, 100>}, {pipeline_mode = #tpu.pipeline_mode<synchronous>, transform_indices = @transform_22, window_bounds = array<i64: 100, 1>}, {pipeline_mode = #tpu.pipeline_mode<synchronous>, transform_indices = @transform_23, window_bounds = array<i64: 1, 1>}, {pipeline_mode = #tpu.pipeline_mode<synchronous>, transform_indices = @transform_24, window_bounds = array<i64: 4, 192>}, {pipeline_mode = #tpu.pipeline_mode<synchronous>, transform_indices = @transform_25, window_bounds = array<i64: 1, 192>}, {pipeline_mode = #tpu.pipeline_mode<synchronous>, transform_indices = @transform_26, window_bounds = array<i64: 192, 192>}, {pipeline_mode = #tpu.pipeline_mode<synchronous>, transform_indices = @transform_27, window_bounds = array<i64: 1, 192>}, {pipeline_mode = #tpu.pipeline_mode<synchronous>, transform_indices = @transform_28, window_bounds = array<i64: 192, 6>}, {pipeline_mode = #tpu.pipeline_mode<synchronous>, transform_indices = @transform_29, window_bounds = array<i64: 1, 6>}, {transform_indices = @transform_30, window_bounds = array<i64: 16, 4>}, {transform_indices = @transform_31, window_bounds = array<i64: 16, 3>}, {transform_indices = @transform_32, window_bounds = array<i64: 16, 3>}, {transform_indices = @transform_33, window_bounds = array<i64: 16, 3>}, {transform_indices = @transform_34, window_bounds = array<i64: 16, 3>}, {transform_indices = @transform_35, window_bounds = array<i64: 16, 1>}, {transform_indices = @transform_36, window_bounds = array<i64: 16, 1>}, {transform_indices = @transform_37, window_bounds = array<i64: 16, 1>}, {transform_indices = @transform_38, window_bounds = array<i64: 16, 1>}, {transform_indices = @transform_39, window_bounds = array<i64: 16, 1>}, {transform_indices = @transform_40, window_bounds = array<i64: 16, 1>}]} {
    %c0 = arith.constant 0 : index
    %c0_0 = arith.constant 0 : index
    %0 = vector.load %arg1[%c0, %c0_0] : memref<16x4xf32, #tpu.memory_space<vmem>>, vector<16x4xf32>
    %c0_1 = arith.constant 0 : index
    %c0_2 = arith.constant 0 : index
    %1 = vector.load %arg5[%c0_1, %c0_2] : memref<4x100xf32, #tpu.memory_space<vmem>>, vector<4x100xf32>
    %cst = arith.constant dense<0.000000e+00> : vector<16x100xf32>
    %2 = tpu.matmul %0, %1, %cst {dimension_numbers = #tpu.dot_dimension_numbers<[1], [0], [0], [1], [0, 0, 1, 1], [], []>} : vector<16x4xf32>, vector<4x100xf32>, vector<16x100xf32> -> vector<16x100xf32>
    %c0_3 = arith.constant 0 : index
    %c0_4 = arith.constant 0 : index
    %3 = vector.load %arg6[%c0_3, %c0_4] : memref<1x100xf32, #tpu.memory_space<vmem>>, vector<1x100xf32>
    %4 = vector.broadcast %3 : vector<1x100xf32> to vector<16x100xf32>
    %5 = arith.addf %2, %4 : vector<16x100xf32>
    %cst_5 = arith.constant 0.000000e+00 : f32
    %6 = vector.broadcast %cst_5 : f32 to vector<16x100xf32>
    %7 = arith.maximumf %5, %6 : vector<16x100xf32>
    %c0_6 = arith.constant 0 : index
    %c0_7 = arith.constant 0 : index
    %8 = vector.load %arg7[%c0_6, %c0_7] : memref<100x3xf32, #tpu.memory_space<vmem>>, vector<100x3xf32>
    %cst_8 = arith.constant dense<0.000000e+00> : vector<16x3xf32>
    %9 = tpu.matmul %7, %8, %cst_8 {dimension_numbers = #tpu.dot_dimension_numbers<[1], [0], [0], [1], [0, 0, 1, 1], [], []>} : vector<16x100xf32>, vector<100x3xf32>, vector<16x3xf32> -> vector<16x3xf32>
    %c0_9 = arith.constant 0 : index
    %c0_10 = arith.constant 0 : index
    %10 = vector.load %arg8[%c0_9, %c0_10] : memref<1x3xf32, #tpu.memory_space<vmem>>, vector<1x3xf32>
    %11 = vector.broadcast %10 : vector<1x3xf32> to vector<16x3xf32>
    %12 = arith.addf %9, %11 : vector<16x3xf32>
    %c0_11 = arith.constant 0 : index
    %c0_12 = arith.constant 0 : index
    %13 = vector.load %arg9[%c0_11, %c0_12] : memref<100x3xf32, #tpu.memory_space<vmem>>, vector<100x3xf32>
    %cst_13 = arith.constant dense<0.000000e+00> : vector<16x3xf32>
    %14 = tpu.matmul %7, %13, %cst_13 {dimension_numbers = #tpu.dot_dimension_numbers<[1], [0], [0], [1], [0, 0, 1, 1], [], []>} : vector<16x100xf32>, vector<100x3xf32>, vector<16x3xf32> -> vector<16x3xf32>
    %c0_14 = arith.constant 0 : index
    %c0_15 = arith.constant 0 : index
    %15 = vector.load %arg10[%c0_14, %c0_15] : memref<1x3xf32, #tpu.memory_space<vmem>>, vector<1x3xf32>
    %16 = vector.broadcast %15 : vector<1x3xf32> to vector<16x3xf32>
    %17 = arith.addf %14, %16 : vector<16x3xf32>
    %cst_16 = arith.constant 5.000000e-01 : f32
    %18 = vector.broadcast %cst_16 : f32 to vector<16x3xf32>
    %19 = arith.mulf %18, %17 : vector<16x3xf32>
    %20 = math.exp %19 : vector<16x3xf32>
    %c0_17 = arith.constant 0 : index
    %c0_18 = arith.constant 0 : index
    %21 = vector.load %arg3[%c0_17, %c0_18] : memref<16x3xf32, #tpu.memory_space<vmem>>, vector<16x3xf32>
    %22 = arith.mulf %20, %21 : vector<16x3xf32>
    %23 = arith.addf %12, %22 : vector<16x3xf32>
    %c0_19 = arith.constant 0 : index
    %c0_20 = arith.constant 0 : index
    %24 = vector.load %arg11[%c0_19, %c0_20] : memref<3x100xf32, #tpu.memory_space<vmem>>, vector<3x100xf32>
    %cst_21 = arith.constant dense<0.000000e+00> : vector<16x100xf32>
    %25 = tpu.matmul %23, %24, %cst_21 {dimension_numbers = #tpu.dot_dimension_numbers<[1], [0], [0], [1], [0, 0, 1, 1], [], []>} : vector<16x3xf32>, vector<3x100xf32>, vector<16x100xf32> -> vector<16x100xf32>
    %c0_22 = arith.constant 0 : index
    %c0_23 = arith.constant 0 : index
    %26 = vector.load %arg12[%c0_22, %c0_23] : memref<1x100xf32, #tpu.memory_space<vmem>>, vector<1x100xf32>
    %27 = vector.broadcast %26 : vector<1x100xf32> to vector<16x100xf32>
    %28 = arith.addf %25, %27 : vector<16x100xf32>
    %cst_24 = arith.constant 0.000000e+00 : f32
    %29 = vector.broadcast %cst_24 : f32 to vector<16x100xf32>
    %30 = arith.maximumf %28, %29 : vector<16x100xf32>
    %c0_25 = arith.constant 0 : index
    %c0_26 = arith.constant 0 : index
    %31 = vector.load %arg13[%c0_25, %c0_26] : memref<100x4xf32, #tpu.memory_space<vmem>>, vector<100x4xf32>
    %cst_27 = arith.constant dense<0.000000e+00> : vector<16x4xf32>
    %32 = tpu.matmul %30, %31, %cst_27 {dimension_numbers = #tpu.dot_dimension_numbers<[1], [0], [0], [1], [0, 0, 1, 1], [], []>} : vector<16x100xf32>, vector<100x4xf32>, vector<16x4xf32> -> vector<16x4xf32>
    %c0_28 = arith.constant 0 : index
    %c0_29 = arith.constant 0 : index
    %33 = vector.load %arg14[%c0_28, %c0_29] : memref<1x4xf32, #tpu.memory_space<vmem>>, vector<1x4xf32>
    %34 = vector.broadcast %33 : vector<1x4xf32> to vector<16x4xf32>
    %35 = arith.addf %32, %34 : vector<16x4xf32>
    %c0_30 = arith.constant 0 : index
    %c0_31 = arith.constant 0 : index
    %36 = vector.load %arg2[%c0_30, %c0_31] : memref<16x1xf32, #tpu.memory_space<vmem>>, vector<16x1xf32>
    %c0_32 = arith.constant 0 : index
    %c0_33 = arith.constant 0 : index
    %37 = vector.load %arg15[%c0_32, %c0_33] : memref<1x100xf32, #tpu.memory_space<vmem>>, vector<1x100xf32>
    %cst_34 = arith.constant dense<0.000000e+00> : vector<16x100xf32>
    %38 = tpu.matmul %36, %37, %cst_34 {dimension_numbers = #tpu.dot_dimension_numbers<[1], [0], [0], [1], [0, 0, 1, 1], [], []>} : vector<16x1xf32>, vector<1x100xf32>, vector<16x100xf32> -> vector<16x100xf32>
    %c0_35 = arith.constant 0 : index
    %c0_36 = arith.constant 0 : index
    %39 = vector.load %arg16[%c0_35, %c0_36] : memref<1x100xf32, #tpu.memory_space<vmem>>, vector<1x100xf32>
    %40 = vector.broadcast %39 : vector<1x100xf32> to vector<16x100xf32>
    %41 = arith.addf %38, %40 : vector<16x100xf32>
    %cst_37 = arith.constant 0.000000e+00 : f32
    %42 = vector.broadcast %cst_37 : f32 to vector<16x100xf32>
    %43 = arith.maximumf %41, %42 : vector<16x100xf32>
    %c0_38 = arith.constant 0 : index
    %c0_39 = arith.constant 0 : index
    %44 = vector.load %arg17[%c0_38, %c0_39] : memref<100x1xf32, #tpu.memory_space<vmem>>, vector<100x1xf32>
    %cst_40 = arith.constant dense<0.000000e+00> : vector<16x1xf32>
    %45 = tpu.matmul %43, %44, %cst_40 {dimension_numbers = #tpu.dot_dimension_numbers<[1], [0], [0], [1], [0, 0, 1, 1], [], []>} : vector<16x100xf32>, vector<100x1xf32>, vector<16x1xf32> -> vector<16x1xf32>
    %c0_41 = arith.constant 0 : index
    %c0_42 = arith.constant 0 : index
    %46 = vector.load %arg18[%c0_41, %c0_42] : memref<1x1xf32, #tpu.memory_space<vmem>>, vector<1x1xf32>
    %47 = vector.broadcast %46 : vector<1x1xf32> to vector<16x1xf32>
    %48 = arith.addf %45, %47 : vector<16x1xf32>
    %c0_43 = arith.constant 0 : index
    %c0_44 = arith.constant 0 : index
    %49 = vector.load %arg19[%c0_43, %c0_44] : memref<100x1xf32, #tpu.memory_space<vmem>>, vector<100x1xf32>
    %cst_45 = arith.constant dense<0.000000e+00> : vector<16x1xf32>
    %50 = tpu.matmul %43, %49, %cst_45 {dimension_numbers = #tpu.dot_dimension_numbers<[1], [0], [0], [1], [0, 0, 1, 1], [], []>} : vector<16x100xf32>, vector<100x1xf32>, vector<16x1xf32> -> vector<16x1xf32>
    %c0_46 = arith.constant 0 : index
    %c0_47 = arith.constant 0 : index
    %51 = vector.load %arg20[%c0_46, %c0_47] : memref<1x1xf32, #tpu.memory_space<vmem>>, vector<1x1xf32>
    %52 = vector.broadcast %51 : vector<1x1xf32> to vector<16x1xf32>
    %53 = arith.addf %50, %52 : vector<16x1xf32>
    %cst_48 = arith.constant 5.000000e-01 : f32
    %54 = vector.broadcast %cst_48 : f32 to vector<16x1xf32>
    %55 = arith.mulf %54, %53 : vector<16x1xf32>
    %56 = math.exp %55 : vector<16x1xf32>
    %c0_49 = arith.constant 0 : index
    %c0_50 = arith.constant 0 : index
    %57 = vector.load %arg4[%c0_49, %c0_50] : memref<16x1xf32, #tpu.memory_space<vmem>>, vector<16x1xf32>
    %58 = arith.mulf %56, %57 : vector<16x1xf32>
    %59 = arith.addf %48, %58 : vector<16x1xf32>
    %c0_51 = arith.constant 0 : index
    %c0_52 = arith.constant 0 : index
    %60 = vector.load %arg21[%c0_51, %c0_52] : memref<1x100xf32, #tpu.memory_space<vmem>>, vector<1x100xf32>
    %cst_53 = arith.constant dense<0.000000e+00> : vector<16x100xf32>
    %61 = tpu.matmul %59, %60, %cst_53 {dimension_numbers = #tpu.dot_dimension_numbers<[1], [0], [0], [1], [0, 0, 1, 1], [], []>} : vector<16x1xf32>, vector<1x100xf32>, vector<16x100xf32> -> vector<16x100xf32>
    %c0_54 = arith.constant 0 : index
    %c0_55 = arith.constant 0 : index
    %62 = vector.load %arg22[%c0_54, %c0_55] : memref<1x100xf32, #tpu.memory_space<vmem>>, vector<1x100xf32>
    %63 = vector.broadcast %62 : vector<1x100xf32> to vector<16x100xf32>
    %64 = arith.addf %61, %63 : vector<16x100xf32>
    %cst_56 = arith.constant 0.000000e+00 : f32
    %65 = vector.broadcast %cst_56 : f32 to vector<16x100xf32>
    %66 = arith.maximumf %64, %65 : vector<16x100xf32>
    %c0_57 = arith.constant 0 : index
    %c0_58 = arith.constant 0 : index
    %67 = vector.load %arg23[%c0_57, %c0_58] : memref<100x1xf32, #tpu.memory_space<vmem>>, vector<100x1xf32>
    %cst_59 = arith.constant dense<0.000000e+00> : vector<16x1xf32>
    %68 = tpu.matmul %66, %67, %cst_59 {dimension_numbers = #tpu.dot_dimension_numbers<[1], [0], [0], [1], [0, 0, 1, 1], [], []>} : vector<16x100xf32>, vector<100x1xf32>, vector<16x1xf32> -> vector<16x1xf32>
    %c0_60 = arith.constant 0 : index
    %c0_61 = arith.constant 0 : index
    %69 = vector.load %arg24[%c0_60, %c0_61] : memref<1x1xf32, #tpu.memory_space<vmem>>, vector<1x1xf32>
    %70 = vector.broadcast %69 : vector<1x1xf32> to vector<16x1xf32>
    %71 = arith.addf %68, %70 : vector<16x1xf32>
    %c0_62 = arith.constant 0 : index
    %c0_63 = arith.constant 0 : index
    %72 = vector.load %arg25[%c0_62, %c0_63] : memref<4x192xf32, #tpu.memory_space<vmem>>, vector<4x192xf32>
    %cst_64 = arith.constant dense<0.000000e+00> : vector<16x192xf32>
    %73 = tpu.matmul %0, %72, %cst_64 {dimension_numbers = #tpu.dot_dimension_numbers<[1], [0], [0], [1], [0, 0, 1, 1], [], []>} : vector<16x4xf32>, vector<4x192xf32>, vector<16x192xf32> -> vector<16x192xf32>
    %c0_65 = arith.constant 0 : index
    %c0_66 = arith.constant 0 : index
    %74 = vector.load %arg26[%c0_65, %c0_66] : memref<1x192xf32, #tpu.memory_space<vmem>>, vector<1x192xf32>
    %75 = vector.broadcast %74 : vector<1x192xf32> to vector<16x192xf32>
    %76 = arith.addf %73, %75 : vector<16x192xf32>
    %cst_67 = arith.constant 0.000000e+00 : f32
    %77 = vector.broadcast %cst_67 : f32 to vector<16x192xf32>
    %78 = arith.maximumf %76, %77 : vector<16x192xf32>
    %c0_68 = arith.constant 0 : index
    %c0_69 = arith.constant 0 : index
    %79 = vector.load %arg27[%c0_68, %c0_69] : memref<192x192xf32, #tpu.memory_space<vmem>>, vector<192x192xf32>
    %cst_70 = arith.constant dense<0.000000e+00> : vector<16x192xf32>
    %80 = tpu.matmul %78, %79, %cst_70 {dimension_numbers = #tpu.dot_dimension_numbers<[1], [0], [0], [1], [0, 0, 1, 1], [], []>} : vector<16x192xf32>, vector<192x192xf32>, vector<16x192xf32> -> vector<16x192xf32>
    %c0_71 = arith.constant 0 : index
    %c0_72 = arith.constant 0 : index
    %81 = vector.load %arg28[%c0_71, %c0_72] : memref<1x192xf32, #tpu.memory_space<vmem>>, vector<1x192xf32>
    %82 = vector.broadcast %81 : vector<1x192xf32> to vector<16x192xf32>
    %83 = arith.addf %80, %82 : vector<16x192xf32>
    %cst_73 = arith.constant 0.000000e+00 : f32
    %84 = vector.broadcast %cst_73 : f32 to vector<16x192xf32>
    %85 = arith.maximumf %83, %84 : vector<16x192xf32>
    %c0_74 = arith.constant 0 : index
    %c0_75 = arith.constant 0 : index
    %86 = vector.load %arg29[%c0_74, %c0_75] : memref<192x6xf32, #tpu.memory_space<vmem>>, vector<192x6xf32>
    %cst_76 = arith.constant dense<0.000000e+00> : vector<16x6xf32>
    %87 = tpu.matmul %85, %86, %cst_76 {dimension_numbers = #tpu.dot_dimension_numbers<[1], [0], [0], [1], [0, 0, 1, 1], [], []>} : vector<16x192xf32>, vector<192x6xf32>, vector<16x6xf32> -> vector<16x6xf32>
    %c0_77 = arith.constant 0 : index
    %c0_78 = arith.constant 0 : index
    %88 = vector.load %arg30[%c0_77, %c0_78] : memref<1x6xf32, #tpu.memory_space<vmem>>, vector<1x6xf32>
    %89 = vector.broadcast %88 : vector<1x6xf32> to vector<16x6xf32>
    %90 = arith.addf %87, %89 : vector<16x6xf32>
    %91 = vector.extract_strided_slice %90 {offsets = [0, 0], sizes = [16, 3], strides = [1, 1]} : vector<16x6xf32> to vector<16x3xf32>
    %92 = vector.extract_strided_slice %90 {offsets = [0, 3], sizes = [16, 3], strides = [1, 1]} : vector<16x6xf32> to vector<16x3xf32>
    %93 = vector.extract_strided_slice %91 {offsets = [0, 0], sizes = [16, 1], strides = [1, 1]} : vector<16x3xf32> to vector<16x1xf32>
    %94 = arith.mulf %93, %59 : vector<16x1xf32>
    %95 = vector.extract_strided_slice %92 {offsets = [0, 0], sizes = [16, 1], strides = [1, 1]} : vector<16x3xf32> to vector<16x1xf32>
    %96 = arith.addf %94, %95 : vector<16x1xf32>
    %cst_79 = arith.constant 0.000000e+00 : f32
    %97 = vector.broadcast %cst_79 : f32 to vector<16x1xf32>
    %98 = arith.maximumf %96, %97 : vector<16x1xf32>
    %99 = vector.extract_strided_slice %91 {offsets = [0, 1], sizes = [16, 1], strides = [1, 1]} : vector<16x3xf32> to vector<16x1xf32>
    %100 = arith.mulf %99, %98 : vector<16x1xf32>
    %101 = vector.extract_strided_slice %92 {offsets = [0, 1], sizes = [16, 1], strides = [1, 1]} : vector<16x3xf32> to vector<16x1xf32>
    %102 = arith.addf %100, %101 : vector<16x1xf32>
    %103 = arith.addf %102, %59 : vector<16x1xf32>
    %104 = vector.extract_strided_slice %91 {offsets = [0, 1], sizes = [16, 1], strides = [1, 1]} : vector<16x3xf32> to vector<16x1xf32>
    %105 = arith.mulf %104, %103 : vector<16x1xf32>
    %106 = vector.extract_strided_slice %92 {offsets = [0, 1], sizes = [16, 1], strides = [1, 1]} : vector<16x3xf32> to vector<16x1xf32>
    %107 = arith.addf %105, %106 : vector<16x1xf32>
    %cst_80 = arith.constant 0.000000e+00 : f32
    %108 = vector.broadcast %cst_80 : f32 to vector<16x1xf32>
    %109 = arith.maximumf %107, %108 : vector<16x1xf32>
    %110 = vector.extract_strided_slice %91 {offsets = [0, 2], sizes = [16, 1], strides = [1, 1]} : vector<16x3xf32> to vector<16x1xf32>
    %111 = arith.mulf %110, %109 : vector<16x1xf32>
    %112 = vector.extract_strided_slice %92 {offsets = [0, 2], sizes = [16, 1], strides = [1, 1]} : vector<16x3xf32> to vector<16x1xf32>
    %113 = arith.addf %111, %112 : vector<16x1xf32>
    %114 = arith.addf %113, %103 : vector<16x1xf32>
    %c0_81 = arith.constant 0 : index
    %c0_82 = arith.constant 0 : index
    %115 = vector.load %arg31[%c0_81, %c0_82] : memref<16x4xf32, #tpu.memory_space<vmem>>, vector<16x4xf32>
    tpu.vector_store %arg31[%c0_81, %c0_82], %35 {strides = array<i32>} : memref<16x4xf32, #tpu.memory_space<vmem>>, vector<16x4xf32>,
    %c0_83 = arith.constant 0 : index
    %c0_84 = arith.constant 0 : index
    %116 = vector.load %arg32[%c0_83, %c0_84] : memref<16x3xf32, #tpu.memory_space<vmem>>, vector<16x3xf32>
    tpu.vector_store %arg32[%c0_83, %c0_84], %23 {strides = array<i32>} : memref<16x3xf32, #tpu.memory_space<vmem>>, vector<16x3xf32>,
    %c0_85 = arith.constant 0 : index
    %c0_86 = arith.constant 0 : index
    %117 = vector.load %arg33[%c0_85, %c0_86] : memref<16x3xf32, #tpu.memory_space<vmem>>, vector<16x3xf32>
    tpu.vector_store %arg33[%c0_85, %c0_86], %12 {strides = array<i32>} : memref<16x3xf32, #tpu.memory_space<vmem>>, vector<16x3xf32>,
    %118 = math.exp %17 : vector<16x3xf32>
    %c0_87 = arith.constant 0 : index
    %c0_88 = arith.constant 0 : index
    %119 = vector.load %arg34[%c0_87, %c0_88] : memref<16x3xf32, #tpu.memory_space<vmem>>, vector<16x3xf32>
    tpu.vector_store %arg34[%c0_87, %c0_88], %118 {strides = array<i32>} : memref<16x3xf32, #tpu.memory_space<vmem>>, vector<16x3xf32>,
    %c0_89 = arith.constant 0 : index
    %c0_90 = arith.constant 0 : index
    %120 = vector.load %arg35[%c0_89, %c0_90] : memref<16x3xf32, #tpu.memory_space<vmem>>, vector<16x3xf32>
    tpu.vector_store %arg35[%c0_89, %c0_90], %17 {strides = array<i32>} : memref<16x3xf32, #tpu.memory_space<vmem>>, vector<16x3xf32>,
    %c0_91 = arith.constant 0 : index
    %c0_92 = arith.constant 0 : index
    %121 = vector.load %arg36[%c0_91, %c0_92] : memref<16x1xf32, #tpu.memory_space<vmem>>, vector<16x1xf32>
    tpu.vector_store %arg36[%c0_91, %c0_92], %71 {strides = array<i32>} : memref<16x1xf32, #tpu.memory_space<vmem>>, vector<16x1xf32>,
    %c0_93 = arith.constant 0 : index
    %c0_94 = arith.constant 0 : index
    %122 = vector.load %arg37[%c0_93, %c0_94] : memref<16x1xf32, #tpu.memory_space<vmem>>, vector<16x1xf32>
    tpu.vector_store %arg37[%c0_93, %c0_94], %59 {strides = array<i32>} : memref<16x1xf32, #tpu.memory_space<vmem>>, vector<16x1xf32>,
    %c0_95 = arith.constant 0 : index
    %c0_96 = arith.constant 0 : index
    %123 = vector.load %arg38[%c0_95, %c0_96] : memref<16x1xf32, #tpu.memory_space<vmem>>, vector<16x1xf32>
    tpu.vector_store %arg38[%c0_95, %c0_96], %48 {strides = array<i32>} : memref<16x1xf32, #tpu.memory_space<vmem>>, vector<16x1xf32>,
    %124 = math.exp %53 : vector<16x1xf32>
    %c0_97 = arith.constant 0 : index
    %c0_98 = arith.constant 0 : index
    %125 = vector.load %arg39[%c0_97, %c0_98] : memref<16x1xf32, #tpu.memory_space<vmem>>, vector<16x1xf32>
    tpu.vector_store %arg39[%c0_97, %c0_98], %124 {strides = array<i32>} : memref<16x1xf32, #tpu.memory_space<vmem>>, vector<16x1xf32>,
    %c0_99 = arith.constant 0 : index
    %c0_100 = arith.constant 0 : index
    %126 = vector.load %arg40[%c0_99, %c0_100] : memref<16x1xf32, #tpu.memory_space<vmem>>, vector<16x1xf32>
    tpu.vector_store %arg40[%c0_99, %c0_100], %53 {strides = array<i32>} : memref<16x1xf32, #tpu.memory_space<vmem>>, vector<16x1xf32>,
    %c0_101 = arith.constant 0 : index
    %c0_102 = arith.constant 0 : index
    %127 = vector.load %arg41[%c0_101, %c0_102] : memref<16x1xf32, #tpu.memory_space<vmem>>, vector<16x1xf32>
    tpu.vector_store %arg41[%c0_101, %c0_102], %114 {strides = array<i32>} : memref<16x1xf32, #tpu.memory_space<vmem>>, vector<16x1xf32>,
    return
  }
  func.func @transform_0(%arg0: i32) -> (i32, i32) {
    %c0_i32 = arith.constant 0 : i32
    %c0_i32_0 = arith.constant 0 : i32
    return %arg0, %c0_i32 : i32, i32
  }
  func.func @transform_1(%arg0: i32) -> (i32, i32) {
    %c0_i32 = arith.constant 0 : i32
    %c0_i32_0 = arith.constant 0 : i32
    return %arg0, %c0_i32 : i32, i32
  }
  func.func @transform_2(%arg0: i32) -> (i32, i32) {
    %c0_i32 = arith.constant 0 : i32
    %c0_i32_0 = arith.constant 0 : i32
    return %arg0, %c0_i32 : i32, i32
  }
  func.func @transform_3(%arg0: i32) -> (i32, i32) {
    %c0_i32 = arith.constant 0 : i32
    %c0_i32_0 = arith.constant 0 : i32
    return %arg0, %c0_i32 : i32, i32
  }
  func.func @transform_4(%arg0: i32) -> (i32, i32) {
    %c0_i32 = arith.constant 0 : i32
    %c0_i32_0 = arith.constant 0 : i32
    %c0_i32_1 = arith.constant 0 : i32
    return %c0_i32, %c0_i32_0 : i32, i32
  }
  func.func @transform_5(%arg0: i32) -> (i32, i32) {
    %c0_i32 = arith.constant 0 : i32
    %c0_i32_0 = arith.constant 0 : i32
    %c0_i32_1 = arith.constant 0 : i32
    return %c0_i32, %c0_i32_0 : i32, i32
  }
  func.func @transform_6(%arg0: i32) -> (i32, i32) {
    %c0_i32 = arith.constant 0 : i32
    %c0_i32_0 = arith.constant 0 : i32
    %c0_i32_1 = arith.constant 0 : i32
    return %c0_i32, %c0_i32_0 : i32, i32
  }
  func.func @transform_7(%arg0: i32) -> (i32, i32) {
    %c0_i32 = arith.constant 0 : i32
    %c0_i32_0 = arith.constant 0 : i32
    %c0_i32_1 = arith.constant 0 : i32
    return %c0_i32, %c0_i32_0 : i32, i32
  }
  func.func @transform_8(%arg0: i32) -> (i32, i32) {
    %c0_i32 = arith.constant 0 : i32
    %c0_i32_0 = arith.constant 0 : i32
    %c0_i32_1 = arith.constant 0 : i32
    return %c0_i32, %c0_i32_0 : i32, i32
  }
  func.func @transform_9(%arg0: i32) -> (i32, i32) {
    %c0_i32 = arith.constant 0 : i32
    %c0_i32_0 = arith.constant 0 : i32
    %c0_i32_1 = arith.constant 0 : i32
    return %c0_i32, %c0_i32_0 : i32, i32
  }
  func.func @transform_10(%arg0: i32) -> (i32, i32) {
    %c0_i32 = arith.constant 0 : i32
    %c0_i32_0 = arith.constant 0 : i32
    %c0_i32_1 = arith.constant 0 : i32
    return %c0_i32, %c0_i32_0 : i32, i32
  }
  func.func @transform_11(%arg0: i32) -> (i32, i32) {
    %c0_i32 = arith.constant 0 : i32
    %c0_i32_0 = arith.constant 0 : i32
    %c0_i32_1 = arith.constant 0 : i32
    return %c0_i32, %c0_i32_0 : i32, i32
  }
  func.func @transform_12(%arg0: i32) -> (i32, i32) {
    %c0_i32 = arith.constant 0 : i32
    %c0_i32_0 = arith.constant 0 : i32
    %c0_i32_1 = arith.constant 0 : i32
    return %c0_i32, %c0_i32_0 : i32, i32
  }
  func.func @transform_13(%arg0: i32) -> (i32, i32) {
    %c0_i32 = arith.constant 0 : i32
    %c0_i32_0 = arith.constant 0 : i32
    %c0_i32_1 = arith.constant 0 : i32
    return %c0_i32, %c0_i32_0 : i32, i32
  }
  func.func @transform_14(%arg0: i32) -> (i32, i32) {
    %c0_i32 = arith.constant 0 : i32
    %c0_i32_0 = arith.constant 0 : i32
    %c0_i32_1 = arith.constant 0 : i32
    return %c0_i32, %c0_i32_0 : i32, i32
  }
  func.func @transform_15(%arg0: i32) -> (i32, i32) {
    %c0_i32 = arith.constant 0 : i32
    %c0_i32_0 = arith.constant 0 : i32
    %c0_i32_1 = arith.constant 0 : i32
    return %c0_i32, %c0_i32_0 : i32, i32
  }
  func.func @transform_16(%arg0: i32) -> (i32, i32) {
    %c0_i32 = arith.constant 0 : i32
    %c0_i32_0 = arith.constant 0 : i32
    %c0_i32_1 = arith.constant 0 : i32
    return %c0_i32, %c0_i32_0 : i32, i32
  }
  func.func @transform_17(%arg0: i32) -> (i32, i32) {
    %c0_i32 = arith.constant 0 : i32
    %c0_i32_0 = arith.constant 0 : i32
    %c0_i32_1 = arith.constant 0 : i32
    return %c0_i32, %c0_i32_0 : i32, i32
  }
  func.func @transform_18(%arg0: i32) -> (i32, i32) {
    %c0_i32 = arith.constant 0 : i32
    %c0_i32_0 = arith.constant 0 : i32
    %c0_i32_1 = arith.constant 0 : i32
    return %c0_i32, %c0_i32_0 : i32, i32
  }
  func.func @transform_19(%arg0: i32) -> (i32, i32) {
    %c0_i32 = arith.constant 0 : i32
    %c0_i32_0 = arith.constant 0 : i32
    %c0_i32_1 = arith.constant 0 : i32
    return %c0_i32, %c0_i32_0 : i32, i32
  }
  func.func @transform_20(%arg0: i32) -> (i32, i32) {
    %c0_i32 = arith.constant 0 : i32
    %c0_i32_0 = arith.constant 0 : i32
    %c0_i32_1 = arith.constant 0 : i32
    return %c0_i32, %c0_i32_0 : i32, i32
  }
  func.func @transform_21(%arg0: i32) -> (i32, i32) {
    %c0_i32 = arith.constant 0 : i32
    %c0_i32_0 = arith.constant 0 : i32
    %c0_i32_1 = arith.constant 0 : i32
    return %c0_i32, %c0_i32_0 : i32, i32
  }
  func.func @transform_22(%arg0: i32) -> (i32, i32) {
    %c0_i32 = arith.constant 0 : i32
    %c0_i32_0 = arith.constant 0 : i32
    %c0_i32_1 = arith.constant 0 : i32
    return %c0_i32, %c0_i32_0 : i32, i32
  }
  func.func @transform_23(%arg0: i32) -> (i32, i32) {
    %c0_i32 = arith.constant 0 : i32
    %c0_i32_0 = arith.constant 0 : i32
    %c0_i32_1 = arith.constant 0 : i32
    return %c0_i32, %c0_i32_0 : i32, i32
  }
  func.func @transform_24(%arg0: i32) -> (i32, i32) {
    %c0_i32 = arith.constant 0 : i32
    %c0_i32_0 = arith.constant 0 : i32
    %c0_i32_1 = arith.constant 0 : i32
    return %c0_i32, %c0_i32_0 : i32, i32
  }
  func.func @transform_25(%arg0: i32) -> (i32, i32) {
    %c0_i32 = arith.constant 0 : i32
    %c0_i32_0 = arith.constant 0 : i32
    %c0_i32_1 = arith.constant 0 : i32
    return %c0_i32, %c0_i32_0 : i32, i32
  }
  func.func @transform_26(%arg0: i32) -> (i32, i32) {
    %c0_i32 = arith.constant 0 : i32
    %c0_i32_0 = arith.constant 0 : i32
    %c0_i32_1 = arith.constant 0 : i32
    return %c0_i32, %c0_i32_0 : i32, i32
  }
  func.func @transform_27(%arg0: i32) -> (i32, i32) {
    %c0_i32 = arith.constant 0 : i32
    %c0_i32_0 = arith.constant 0 : i32
    %c0_i32_1 = arith.constant 0 : i32
    return %c0_i32, %c0_i32_0 : i32, i32
  }
  func.func @transform_28(%arg0: i32) -> (i32, i32) {
    %c0_i32 = arith.constant 0 : i32
    %c0_i32_0 = arith.constant 0 : i32
    %c0_i32_1 = arith.constant 0 : i32
    return %c0_i32, %c0_i32_0 : i32, i32
  }
  func.func @transform_29(%arg0: i32) -> (i32, i32) {
    %c0_i32 = arith.constant 0 : i32
    %c0_i32_0 = arith.constant 0 : i32
    %c0_i32_1 = arith.constant 0 : i32
    return %c0_i32, %c0_i32_0 : i32, i32
  }
  func.func @transform_30(%arg0: i32) -> (i32, i32) {
    %c0_i32 = arith.constant 0 : i32
    %c0_i32_0 = arith.constant 0 : i32
    return %arg0, %c0_i32 : i32, i32
  }
  func.func @transform_31(%arg0: i32) -> (i32, i32) {
    %c0_i32 = arith.constant 0 : i32
    %c0_i32_0 = arith.constant 0 : i32
    return %arg0, %c0_i32 : i32, i32
  }
  func.func @transform_32(%arg0: i32) -> (i32, i32) {
    %c0_i32 = arith.constant 0 : i32
    %c0_i32_0 = arith.constant 0 : i32
    return %arg0, %c0_i32 : i32, i32
  }
  func.func @transform_33(%arg0: i32) -> (i32, i32) {
    %c0_i32 = arith.constant 0 : i32
    %c0_i32_0 = arith.constant 0 : i32
    return %arg0, %c0_i32 : i32, i32
  }
  func.func @transform_34(%arg0: i32) -> (i32, i32) {
    %c0_i32 = arith.constant 0 : i32
    %c0_i32_0 = arith.constant 0 : i32
    return %arg0, %c0_i32 : i32, i32
  }
  func.func @transform_35(%arg0: i32) -> (i32, i32) {
    %c0_i32 = arith.constant 0 : i32
    %c0_i32_0 = arith.constant 0 : i32
    return %arg0, %c0_i32 : i32, i32
  }
  func.func @transform_36(%arg0: i32) -> (i32, i32) {
    %c0_i32 = arith.constant 0 : i32
    %c0_i32_0 = arith.constant 0 : i32
    return %arg0, %c0_i32 : i32, i32
  }
  func.func @transform_37(%arg0: i32) -> (i32, i32) {
    %c0_i32 = arith.constant 0 : i32
    %c0_i32_0 = arith.constant 0 : i32
    return %arg0, %c0_i32 : i32, i32
  }
  func.func @transform_38(%arg0: i32) -> (i32, i32) {
    %c0_i32 = arith.constant 0 : i32
    %c0_i32_0 = arith.constant 0 : i32
    return %arg0, %c0_i32 : i32, i32
  }
  func.func @transform_39(%arg0: i32) -> (i32, i32) {
    %c0_i32 = arith.constant 0 : i32
    %c0_i32_0 = arith.constant 0 : i32
    return %arg0, %c0_i32 : i32, i32
  }
  func.func @transform_40(%arg0: i32) -> (i32, i32) {
    %c0_i32 = arith.constant 0 : i32
    %c0_i32_0 = arith.constant 0 : i32
    return %arg0, %c0_i32 : i32, i32
  }
}

module attributes {stable_mosaic.version = 11 : i64} {
  func.func @_idw_decode_kernel(%arg0: i32, %arg1: memref<16x4xf32, #tpu.memory_space<vmem>>, %arg2: memref<16x4xf32, #tpu.memory_space<vmem>>, %arg3: memref<16x1xf32, #tpu.memory_space<vmem>>, %arg4: memref<1x4xf32, #tpu.memory_space<vmem>>, %arg5: memref<1x1xf32, #tpu.memory_space<vmem>>, %arg6: memref<1x100xf32, #tpu.memory_space<vmem>>, %arg7: memref<1x100xf32, #tpu.memory_space<vmem>>, %arg8: memref<100x1xf32, #tpu.memory_space<vmem>>, %arg9: memref<1x1xf32, #tpu.memory_space<vmem>>, %arg10: memref<16x16xf32, #tpu.memory_space<vmem>>, %arg11: memref<16x1xf32, #tpu.memory_space<vmem>>, %arg12: memref<16x1xf32, #tpu.memory_space<vmem>>) attributes {dimension_semantics = [#tpu.dimension_semantics<parallel>], iteration_bounds = array<i64: 1>, scalar_prefetch = 0 : i64, scratch_operands = 0 : i64, tpu.core_type = #tpu.core_type<tc>, window_params = [{transform_indices = @transform_0, window_bounds = array<i64: 16, 4>}, {pipeline_mode = #tpu.pipeline_mode<synchronous>, transform_indices = @transform_1, window_bounds = array<i64: 16, 4>}, {pipeline_mode = #tpu.pipeline_mode<synchronous>, transform_indices = @transform_2, window_bounds = array<i64: 16, 1>}, {pipeline_mode = #tpu.pipeline_mode<synchronous>, transform_indices = @transform_3, window_bounds = array<i64: 1, 4>}, {pipeline_mode = #tpu.pipeline_mode<synchronous>, transform_indices = @transform_4, window_bounds = array<i64: 1, 1>}, {pipeline_mode = #tpu.pipeline_mode<synchronous>, transform_indices = @transform_5, window_bounds = array<i64: 1, 100>}, {pipeline_mode = #tpu.pipeline_mode<synchronous>, transform_indices = @transform_6, window_bounds = array<i64: 1, 100>}, {pipeline_mode = #tpu.pipeline_mode<synchronous>, transform_indices = @transform_7, window_bounds = array<i64: 100, 1>}, {pipeline_mode = #tpu.pipeline_mode<synchronous>, transform_indices = @transform_8, window_bounds = array<i64: 1, 1>}, {transform_indices = @transform_9, window_bounds = array<i64: 16, 16>}, {transform_indices = @transform_10, window_bounds = array<i64: 16, 1>}, {transform_indices = @transform_11, window_bounds = array<i64: 16, 1>}]} {
    %c0 = arith.constant 0 : index
    %c0_0 = arith.constant 0 : index
    %0 = vector.load %arg4[%c0, %c0_0] : memref<1x4xf32, #tpu.memory_space<vmem>>, vector<1x4xf32>
    %c0_1 = arith.constant 0 : index
    %c0_2 = arith.constant 0 : index
    %1 = vector.load %arg1[%c0_1, %c0_2] : memref<16x4xf32, #tpu.memory_space<vmem>>, vector<16x4xf32>
    %2 = vector.broadcast %0 : vector<1x4xf32> to vector<16x4xf32>
    %3 = arith.divf %1, %2 : vector<16x4xf32>
    %c0_3 = arith.constant 0 : index
    %c0_4 = arith.constant 0 : index
    %4 = vector.load %arg2[%c0_3, %c0_4] : memref<16x4xf32, #tpu.memory_space<vmem>>, vector<16x4xf32>
    %5 = vector.broadcast %0 : vector<1x4xf32> to vector<16x4xf32>
    %6 = arith.divf %4, %5 : vector<16x4xf32>
    %7 = arith.mulf %3, %3 : vector<16x4xf32>
    %cst = arith.constant dense<0.000000e+00> : vector<16xf32>
    %8 = vector.multi_reduction <add>, %7, %cst [1] : vector<16x4xf32> to vector<16xf32>
    %9 = vector.shape_cast %8 : vector<16xf32> to vector<16x1xf32>
    %10 = arith.mulf %6, %6 : vector<16x4xf32>
    %cst_5 = arith.constant dense<0.000000e+00> : vector<16xf32>
    %11 = vector.multi_reduction <add>, %10, %cst_5 [1] : vector<16x4xf32> to vector<16xf32>
    %12 = vector.shape_cast %11 : vector<16xf32> to vector<16x1xf32>
    %cst_6 = arith.constant dense<0.000000e+00> : vector<16x16xf32>
    %13 = tpu.matmul %3, %6, %cst_6 {dimension_numbers = #tpu.dot_dimension_numbers<[1], [1], [0], [0], [0, 0, 1, 0], [], []>} : vector<16x4xf32>, vector<16x4xf32>, vector<16x16xf32> -> vector<16x16xf32>
    %14 = tpu.transpose %12, [1, 0] : vector<16x1xf32> -> vector<1x16xf32>
    %15 = vector.broadcast %9 : vector<16x1xf32> to vector<16x16xf32>
    %16 = vector.broadcast %14 : vector<1x16xf32> to vector<16x16xf32>
    %17 = arith.addf %15, %16 : vector<16x16xf32>
    %cst_7 = arith.constant 2.000000e+00 : f32
    %18 = vector.broadcast %cst_7 : f32 to vector<16x16xf32>
    %19 = arith.mulf %18, %13 : vector<16x16xf32>
    %20 = arith.subf %17, %19 : vector<16x16xf32>
    %cst_8 = arith.constant 0.000000e+00 : f32
    %21 = vector.broadcast %cst_8 : f32 to vector<16x16xf32>
    %22 = arith.maximumf %20, %21 : vector<16x16xf32>
    %23 = tpu.iota {dimensions = array<i32: 0>} : vector<16x16xi32>
    %c16_i32 = arith.constant 16 : i32
    %24 = arith.muli %arg0, %c16_i32 : i32
    %25 = vector.broadcast %24 : i32 to vector<16x16xi32>
    %26 = arith.addi %23, %25 : vector<16x16xi32>
    %27 = tpu.iota {dimensions = array<i32: 1>} : vector<16x16xi32>
    %28 = arith.cmpi eq, %26, %27 : vector<16x16xi32>
    %cst_9 = arith.constant 0.000000e+00 : f32
    %29 = vector.broadcast %cst_9 : f32 to vector<16x16xf32>
    %30 = arith.select %28, %29, %22 : vector<16x16xi1>, vector<16x16xf32>
    %c0_10 = arith.constant 0 : index
    %c0_11 = arith.constant 0 : index
    %31 = vector.load %arg5[%c0_10, %c0_11] : memref<1x1xf32, #tpu.memory_space<vmem>>, vector<1x1xf32>
    %cst_12 = arith.constant 5.000000e-01 : f32
    %32 = vector.broadcast %cst_12 : f32 to vector<1x1xf32>
    %33 = arith.mulf %32, %31 : vector<1x1xf32>
    %cst_13 = arith.constant 1.000000e-36 : f32
    %34 = vector.broadcast %cst_13 : f32 to vector<16x16xf32>
    %35 = arith.maximumf %30, %34 : vector<16x16xf32>
    %36 = math.log %35 : vector<16x16xf32>
    %37 = vector.broadcast %33 : vector<1x1xf32> to vector<16x16xf32>
    %38 = arith.mulf %37, %36 : vector<16x16xf32>
    %39 = math.exp %38 : vector<16x16xf32>
    %cst_14 = arith.constant 9.99999997E-7 : f32
    %40 = vector.broadcast %cst_14 : f32 to vector<16x16xf32>
    %41 = arith.addf %39, %40 : vector<16x16xf32>
    %cst_15 = arith.constant 1.000000e+00 : f32
    %42 = vector.broadcast %cst_15 : f32 to vector<16x16xf32>
    %43 = arith.divf %42, %41 : vector<16x16xf32>
    %c0_16 = arith.constant 0 : index
    %c0_17 = arith.constant 0 : index
    %44 = vector.load %arg10[%c0_16, %c0_17] : memref<16x16xf32, #tpu.memory_space<vmem>>, vector<16x16xf32>
    tpu.vector_store %arg10[%c0_16, %c0_17], %43 {strides = array<i32>} : memref<16x16xf32, #tpu.memory_space<vmem>>, vector<16x16xf32>,
    %cst_18 = arith.constant dense<0.000000e+00> : vector<16xf32>
    %45 = vector.multi_reduction <add>, %43, %cst_18 [1] : vector<16x16xf32> to vector<16xf32>
    %46 = vector.shape_cast %45 : vector<16xf32> to vector<16x1xf32>
    %c0_19 = arith.constant 0 : index
    %c0_20 = arith.constant 0 : index
    %47 = vector.load %arg3[%c0_19, %c0_20] : memref<16x1xf32, #tpu.memory_space<vmem>>, vector<16x1xf32>
    %cst_21 = arith.constant dense<0.000000e+00> : vector<16x1xf32>
    %48 = tpu.matmul %43, %47, %cst_21 {dimension_numbers = #tpu.dot_dimension_numbers<[1], [0], [0], [1], [0, 0, 1, 1], [], []>} : vector<16x16xf32>, vector<16x1xf32>, vector<16x1xf32> -> vector<16x1xf32>
    %49 = tpu.reciprocal %46 {approx = true} : vector<16x1xf32> -> vector<16x1xf32>
    %50 = arith.mulf %48, %49 : vector<16x1xf32>
    %c0_22 = arith.constant 0 : index
    %c0_23 = arith.constant 0 : index
    %51 = vector.load %arg11[%c0_22, %c0_23] : memref<16x1xf32, #tpu.memory_space<vmem>>, vector<16x1xf32>
    tpu.vector_store %arg11[%c0_22, %c0_23], %50 {strides = array<i32>} : memref<16x1xf32, #tpu.memory_space<vmem>>, vector<16x1xf32>,
    %c0_24 = arith.constant 0 : index
    %c0_25 = arith.constant 0 : index
    %52 = vector.load %arg6[%c0_24, %c0_25] : memref<1x100xf32, #tpu.memory_space<vmem>>, vector<1x100xf32>
    %cst_26 = arith.constant dense<0.000000e+00> : vector<16x100xf32>
    %53 = tpu.matmul %50, %52, %cst_26 {dimension_numbers = #tpu.dot_dimension_numbers<[1], [0], [0], [1], [0, 0, 1, 1], [], []>} : vector<16x1xf32>, vector<1x100xf32>, vector<16x100xf32> -> vector<16x100xf32>
    %c0_27 = arith.constant 0 : index
    %c0_28 = arith.constant 0 : index
    %54 = vector.load %arg7[%c0_27, %c0_28] : memref<1x100xf32, #tpu.memory_space<vmem>>, vector<1x100xf32>
    %55 = vector.broadcast %54 : vector<1x100xf32> to vector<16x100xf32>
    %56 = arith.addf %53, %55 : vector<16x100xf32>
    %cst_29 = arith.constant 0.000000e+00 : f32
    %57 = vector.broadcast %cst_29 : f32 to vector<16x100xf32>
    %58 = arith.maximumf %56, %57 : vector<16x100xf32>
    %c0_30 = arith.constant 0 : index
    %c0_31 = arith.constant 0 : index
    %59 = vector.load %arg8[%c0_30, %c0_31] : memref<100x1xf32, #tpu.memory_space<vmem>>, vector<100x1xf32>
    %cst_32 = arith.constant dense<0.000000e+00> : vector<16x1xf32>
    %60 = tpu.matmul %58, %59, %cst_32 {dimension_numbers = #tpu.dot_dimension_numbers<[1], [0], [0], [1], [0, 0, 1, 1], [], []>} : vector<16x100xf32>, vector<100x1xf32>, vector<16x1xf32> -> vector<16x1xf32>
    %c0_33 = arith.constant 0 : index
    %c0_34 = arith.constant 0 : index
    %61 = vector.load %arg9[%c0_33, %c0_34] : memref<1x1xf32, #tpu.memory_space<vmem>>, vector<1x1xf32>
    %62 = vector.broadcast %61 : vector<1x1xf32> to vector<16x1xf32>
    %63 = arith.addf %60, %62 : vector<16x1xf32>
    %c0_35 = arith.constant 0 : index
    %c0_36 = arith.constant 0 : index
    %64 = vector.load %arg12[%c0_35, %c0_36] : memref<16x1xf32, #tpu.memory_space<vmem>>, vector<16x1xf32>
    tpu.vector_store %arg12[%c0_35, %c0_36], %63 {strides = array<i32>} : memref<16x1xf32, #tpu.memory_space<vmem>>, vector<16x1xf32>,
    return
  }
  func.func @transform_0(%arg0: i32) -> (i32, i32) {
    %c0_i32 = arith.constant 0 : i32
    %c0_i32_0 = arith.constant 0 : i32
    return %arg0, %c0_i32 : i32, i32
  }
  func.func @transform_1(%arg0: i32) -> (i32, i32) {
    %c0_i32 = arith.constant 0 : i32
    %c0_i32_0 = arith.constant 0 : i32
    %c0_i32_1 = arith.constant 0 : i32
    return %c0_i32, %c0_i32_0 : i32, i32
  }
  func.func @transform_2(%arg0: i32) -> (i32, i32) {
    %c0_i32 = arith.constant 0 : i32
    %c0_i32_0 = arith.constant 0 : i32
    %c0_i32_1 = arith.constant 0 : i32
    return %c0_i32, %c0_i32_0 : i32, i32
  }
  func.func @transform_3(%arg0: i32) -> (i32, i32) {
    %c0_i32 = arith.constant 0 : i32
    %c0_i32_0 = arith.constant 0 : i32
    %c0_i32_1 = arith.constant 0 : i32
    return %c0_i32, %c0_i32_0 : i32, i32
  }
  func.func @transform_4(%arg0: i32) -> (i32, i32) {
    %c0_i32 = arith.constant 0 : i32
    %c0_i32_0 = arith.constant 0 : i32
    %c0_i32_1 = arith.constant 0 : i32
    return %c0_i32, %c0_i32_0 : i32, i32
  }
  func.func @transform_5(%arg0: i32) -> (i32, i32) {
    %c0_i32 = arith.constant 0 : i32
    %c0_i32_0 = arith.constant 0 : i32
    %c0_i32_1 = arith.constant 0 : i32
    return %c0_i32, %c0_i32_0 : i32, i32
  }
  func.func @transform_6(%arg0: i32) -> (i32, i32) {
    %c0_i32 = arith.constant 0 : i32
    %c0_i32_0 = arith.constant 0 : i32
    %c0_i32_1 = arith.constant 0 : i32
    return %c0_i32, %c0_i32_0 : i32, i32
  }
  func.func @transform_7(%arg0: i32) -> (i32, i32) {
    %c0_i32 = arith.constant 0 : i32
    %c0_i32_0 = arith.constant 0 : i32
    %c0_i32_1 = arith.constant 0 : i32
    return %c0_i32, %c0_i32_0 : i32, i32
  }
  func.func @transform_8(%arg0: i32) -> (i32, i32) {
    %c0_i32 = arith.constant 0 : i32
    %c0_i32_0 = arith.constant 0 : i32
    %c0_i32_1 = arith.constant 0 : i32
    return %c0_i32, %c0_i32_0 : i32, i32
  }
  func.func @transform_9(%arg0: i32) -> (i32, i32) {
    %c0_i32 = arith.constant 0 : i32
    %c0_i32_0 = arith.constant 0 : i32
    return %arg0, %c0_i32 : i32, i32
  }
  func.func @transform_10(%arg0: i32) -> (i32, i32) {
    %c0_i32 = arith.constant 0 : i32
    %c0_i32_0 = arith.constant 0 : i32
    return %arg0, %c0_i32 : i32, i32
  }
  func.func @transform_11(%arg0: i32) -> (i32, i32) {
    %c0_i32 = arith.constant 0 : i32
    %c0_i32_0 = arith.constant 0 : i32
    return %arg0, %c0_i32 : i32, i32
  }
}

</mosaic_0001>

<bundles_post_ra>
// kernel: deep_idw_forward.3
= control target key start
LH: loop header
LB: loop body
LE: loop exit
PB: predicated region body
PF: predicated region fallthrough
CT: control target
= control target key end

     0   :  { %s917_s0 = inlined_call_operand.vmem [shape: f32[16,4], index: 0, kind: input, shape index: {}, may-alias: {0,1}]   ;;  %s918_s1 = inlined_call_operand.vmem [shape: f32[16,4], index: 1, kind: input, shape index: {}, may-alias: {0,1}]   ;;  %s919_s2 = inlined_call_operand.vmem [shape: f32[16,1], index: 2, kind: input, shape index: {}]   ;;  %s920_s3 = inlined_call_operand.vmem [shape: f32[1,4], index: 3, kind: input, shape index: {}]   ;;  %s921_s4 = inlined_call_operand.<no memory space> [shape: f32[1,1], index: 4, kind: input, shape index: {}]   ;;  %s922_s5 = inlined_call_operand.vmem [shape: f32[1,100], index: 5, kind: input, shape index: {}]   ;;  %s923_s6 = inlined_call_operand.vmem [shape: f32[1,100], index: 6, kind: input, shape index: {}]   ;;  %s924_s7 = inlined_call_operand.vmem [shape: f32[100,1], index: 7, kind: input, shape index: {}]   ;;  %s925_s9 = inlined_call_operand.hbm [shape: f32[16,16], index: 9, kind: output, shape index: {0}]   ;;  %s926_s10 = inlined_call_operand.vmem [shape: f32[16,1], index: 10, kind: output, shape index: {1}]   ;;  %s927_s11 = inlined_call_operand.vmem [shape: f32[16,1], index: 11, kind: output, shape index: {2}]   ;;  %s928_s8 = inlined_call_operand.<no memory space> [shape: f32[1,1], index: 8, kind: input, shape index: {}]  }
   0x1   :  { %v17_v0 = vstv %s921_s4  ;;  %v19_v1 = vstv %s928_s8 }
   0x2   :  { %18 = vst [vmem:[#allocation2] sm:$0x1] %v17_v0  ;;  %20 = vst [vmem:[#allocation3] sm:$0x1] %v19_v1 }
   0x3   :  { %v572_v2 = vld [vmem:[%s920_s3] ss:$0 sm:$0xff] }
   0x4   :  { %701 = vrcp.f32 %v572_v2 }
   0x5   :  { %21 = vsyncpa [#allocation5], 0  ;;  %v52_v3 = vld [vmem:[%s918_s1] sm:$0xff]  ;;  %v53_v4 = vld [vmem:[%s918_s1 + $0x8] sm:$0xff]  ;;  %vm58_vm0 = vcmask 31744   ;;  %v192_v21 = vlaneseq  ;;  %v743_v23 = vmov 0  }
   0x6   :  { %v41_v5 = vld [vmem:[%s917_s0] sm:$0xff]  ;;  %v42_v6 = vld [vmem:[%s917_s0 + $0x8] sm:$0xff]  ;;  %vm662_vm1 = vmpackc.low %vm58_vm0, %vm58_vm0  ;;  %700 = vset.pattern.permute.xlu0 %v743_v23  ;;  %vm246_vm4 = vcmask 130048   ;;  %vm359_vm5 = vcmask 1040384   ;;  %vm342_vm6 = vcmask 7168   ;;  %vm467_vm7 = vcmask 1043456  }
   0x7   :  { %v193_v24 = vshrl.u32 %v192_v21, 7  ;;  %v255_v30 = vld [vmem:[%s919_s2] sm:$0xff]  ;;  %v256_v31 = vld [vmem:[%s919_s2 + $0x8] sm:$0xff]  ;;  %v212_v42 = vand.u32 127, %v192_v21  ;;  %vm460_vm8 = vcmask 818176   ;;  %s744_s17 = smov [#allocation4]  }
   0x8   :  { %v667_v32 = vpack.c.bf16 %v256_v31, %v255_v30  ;;  %v450_v30 = vld [vmem:[%s924_s7 + $0x50] sm:$0xff]  ;;  %v451_v31 = vld [vmem:[%s924_s7 + $0x58] sm:$0xff]  ;;  %s553_s18 = sshll.u32 %s744_s17, 4  ;;  %s554_s18 = int_to_ptr.vmem [resolvable:$true] %s553_s18 }
   0x9   :  { %v217_v22 = vld [vmem:[#allocation2] sm:$0x1]  ;;  %v194_v26 = vsub.s32 0, %v193_v24  ;;  %v206_v41 = vadd.s32 8, %v193_v24  ;;  %vm213_vm3 = vcmp.eq.s32.totalorder %v193_v24, %v212_v42  ;;  %p724_p1 = scmp.lt.s32.totalorder %s554_s18, %s554_s18 }
   0xa   :  { %v218_v25 = vmul.f32 0.5, %v217_v22 }
   0xb   :  { %vm214_vm2 = vcmp.eq.s32.totalorder %v206_v41, %v212_v42 }
   0xc   :  { %v229_v27 = vrot.slane %v218_v25, %v194_v26 }
   0xe   :  { %v702_v7 = vpop.eup %701 }
   0xf   :  { %v54_v8 = vmul.f32 %v702_v7, %v52_v3  ;;  %v55_v9 = vmul.f32 %v702_v7, %v53_v4  ;;  %v50_v10 = vmul.f32 %v702_v7, %v41_v5  ;;  %v51_v11 = vmul.f32 %v702_v7, %v42_v6  ;;  %v345_v6 = vld [vmem:[%s922_s5] sm:$0x1] }
  0x10   :  { %v440_v7 = vld [vmem:[%s924_s7] sm:$0xff] }
  0x11   :  { %v65_v12 = vmul.f32 %v54_v8, %v54_v8  ;;  %v66_v13 = vmul.f32 %v55_v9, %v55_v9  ;;  %v661_v14 = vpack.c.bf16 %v55_v9, %v54_v8  ;;  %617 = vmatprep.mubr.msk.f32.mxu1 %vm58_vm0, %v50_v10  ;;  %v56_v15 = vmul.f32 %v50_v10, %v50_v10  ;;  %v441_v8 = vld [vmem:[%s924_s7 + $0x8] sm:$0xff]  ;;  %v442_v9 = vld [vmem:[%s924_s7 + $0x10] sm:$0xff] }
  0x12   :  { %v57_v16 = vmul.f32 %v51_v11, %v51_v11  ;;  %v671_v10 = vpack.c.bf16 %v441_v8, %v440_v7 }
  0x13   :  { %v67_v17 = vsel %vm58_vm0, %v65_v12, 0.0  ;;  %663 = vmatprep.subr.msk.bf16.mxu1 %vm662_vm1, %v661_v14  ;;  %v59_v18 = vsel %vm58_vm0, %v56_v15, 0.0  ;;  %v70_v19 = vsel %vm58_vm0, %v66_v13, 0.0  ;;  %v444_v13 = vld [vmem:[%s924_s7 + $0x20] sm:$0xff] }
  0x14   :  { %68 = vadd.xlane.f32.xlu0 %v67_v17  ;;  %666 = vmatpush3.bf16.xpose.msk.msra.mxu1 %vm662_vm1, %v661_v14  ;;  %v62_v20 = vsel %vm58_vm0, %v57_v16, 0.0  ;;  %v445_v14 = vld [vmem:[%s924_s7 + $0x28] sm:$0xff]  ;;  %v446_v16 = vld [vmem:[%s924_s7 + $0x30] sm:$0xff]  ;;  %v447_v17 = vld [vmem:[%s924_s7 + $0x38] sm:$0xff] }
  0x15   :  { %60 = vadd.xlane.f32.xlu1 %v59_v18  ;;  %668 = vmatprep.subr.bf16.mxu1 %v667_v32  ;;  %v679_v15 = vpack.c.bf16 %v445_v14, %v444_v13  ;;  %v683_v18 = vpack.c.bf16 %v447_v17, %v446_v16 }
  0x16   :  { %672 = vmatprep.subr.bf16.mxu0 %v671_v10 }
  0x17   :  { %674 = vmatpush3.bf16.msra.mxu0 %v671_v10 }
  0x18   :  { %71 = vadd.xlane.f32.xlu0 %v70_v19  ;;  %v448_v19 = vld [vmem:[%s924_s7 + $0x40] sm:$0xff] }
  0x19   :  { %63 = vadd.xlane.f32.xlu1 %v62_v20  ;;  %v449_v20 = vld [vmem:[%s924_s7 + $0x48] sm:$0xff] }
  0x1a   :  { %v687_v21 = vpack.c.bf16 %v449_v20, %v448_v19 }
  0x1b   :  { %618 = vmatmul.mubr.msk.f32.vlgmr.msra.gmra.mrb[0].mxu1 %vm58_vm0, %v51_v11  ;;  %v443_v11 = vld [vmem:[%s924_s7 + $0x18] sm:$0xff] }
  0x1c   :  { %670 = vmatpush3.bf16.msra.mxu1 %v667_v32  ;;  %v675_v12 = vpack.c.bf16 %v443_v11, %v442_v9  ;;  %v691_v32 = vpack.c.bf16 %v451_v31, %v450_v30 }
  0x1d   :  { %627 = vmatprep.subr.msk.mxu1 %vm359_vm5, %v345_v6 }
  0x1e   :  { %676 = vmatprep.subr.bf16.mxu0 %v675_v12 }
  0x1f   :  { %678 = vmatpush3.bf16.msra.mxu0 %v675_v12 }
  0x20   :  { %680 = vmatprep.subr.bf16.mxu0 %v679_v15 }
  0x23   :  { %682 = vmatpush3.bf16.msra.mxu0 %v679_v15 }
  0x24   :  { %684 = vmatprep.subr.bf16.mxu0 %v683_v18 }
  0x27   :  { %686 = vmatpush3.bf16.msra.mxu0 %v683_v18 }
  0x28   :  { %688 = vmatprep.subr.bf16.mxu0 %v687_v21 }
  0x2b   :  { %690 = vmatpush3.bf16.msra.mxu0 %v687_v21 }
  0x2c   :  { %692 = vmatprep.subr.bf16.mxu0 %v691_v32 }
  0x2e   :  { %231 = vperm.xlu0 %700, %v229_v27  }
  0x2f   :  { %694 = vmatpush3.bf16.msra.mxu0 %v691_v32 }
  0xa1   :  { %v69_v28 = vpop.xlane.xlu0 %68 }
  0xa2   :  { %160 = vxpose.xlu1.b32.start [1/2] (short) (narrow) %v69_v28, 8  ;;  %v61_v35 = vpop.xlane.xlu1 %60 }
  0xa5   :  { %v72_v29 = vpop.xlane.xlu0 %71 }
  0xa6   :  { %161 = vxpose.xlu1.b32.end [2/2] (short) (narrow) %v72_v29, 8  ;;  %v64_v36 = vpop.xlane.xlu1 %63 }
  0xad   :  { %v232_v54 = vpop.permute.xlu0 %231 }
  0xee   :  { %v619_v33 = vpop.f32.mrb[0].mxu1 }
  0xef   :  { %v151_v34 = vpop.f32.mrb[1].mxu1  ;;  %v199_v38 = vmul.f32 2.0, %v619_v33  ;;  %v452_v33 = vld [vmem:[%s924_s7 + $0x60] sm:$0xf]  ;;  %s719_s7 = scalar_lea.vmem %s554_s18, 256 }
  0xf0   :  { %v198_v40 = vmul.f32 2.0, %v151_v34  ;;  %656 = vmatprep.subr.msk.mxu0 %vm467_vm7, %v452_v33  ;;  %v579_v34 = vld [vmem:[%s923_s6] ss:$0 sm:$0xff]  ;;  %p720_p0 = scmp.ne.s32.totalorder %s554_s18, %s719_s7  ;;  %p725_p2 = scmp.lt.s32.totalorder %s719_s7, %s719_s7 }
  0xf1   :  { %657 = vmatpush3.msk.msra.mxu0 %vm467_vm7, %v452_v33 }
  0xf2   :  { %p726_p3 = por %p725_p2, %p724_p1 }
  0xf4   :  { %p727_p4 = pnand %p726_p3, %p720_p0 }
 0x122   :  { %v176_v37 = vpop.trf.xlu1 }
 0x123   :  { %v195_v39 = vrot.slane %v176_v37, %v194_v26 }
 0x125   :  { %v196_v43 = vadd.f32 %v195_v39, %v61_v35  ;;  %v197_v44 = vadd.f32 %v195_v39, %v64_v36 }
 0x127   :  { %v201_v45 = vsub.f32 %v197_v44, %v199_v38  ;;  %v200_v46 = vsub.f32 %v196_v43, %v198_v40 }
 0x129   :  { %v203_v47 = vmax.f32 %v201_v45, 0.0  ;;  %v202_v48 = vmax.f32 %v200_v46, 0.0 }
 0x12b   :  { %v216_v49 = vsel %vm214_vm2, 0.0, %v203_v47  ;;  %v215_v50 = vsel %vm213_vm3, 0.0, %v202_v48 }
 0x12c   :  { %v219_v51 = vmax.f32 %v215_v50, 1e-36  ;;  %v220_v52 = vmax.f32 %v216_v49, 1e-36 }
 0x12e   :  { %703 = vlog2.f32 %v219_v51 }
 0x12f   :  { %705 = vlog2.f32 %v220_v52 }
 0x138   :  { %v704_v53 = vpop.eup %703 }
 0x139   :  { %v706_v55 = vpop.eup %705  ;;  %v222_v56 = vmul.f32 0.6931472, %v704_v53 }
 0x13a   :  { %v224_v57 = vmul.f32 0.6931472, %v706_v55 }
 0x13b   :  { %v234_v58 = vmul.f32 %v232_v54, %v222_v56 }
 0x13c   :  { %v235_v59 = vmul.f32 %v232_v54, %v224_v57 }
 0x13d   :  { %v236_v60 = vmul.f32 1.442695, %v234_v58 }
 0x13e   :  { %v238_v61 = vmul.f32 1.442695, %v235_v59 }
 0x13f   :  { %707 = vpow2.f32 %v236_v60 }
 0x140   :  { %709 = vpow2.f32 %v238_v61 }
 0x149   :  { %v708_v62 = vpop.eup %707 }
 0x14a   :  { %v710_v63 = vpop.eup %709  ;;  %v240_v0 = vadd.f32 1e-06, %v708_v62 }
 0x14b   :  { %v241_v1 = vadd.f32 1e-06, %v710_v63 }
 0x14c   :  { %711 = vrcp.f32 %v240_v0 }
 0x14d   :  { %713 = vrcp.f32 %v241_v1 }
 0x156   :  { %v712_v2 = vpop.eup %711 }
 0x157   :  { %v714_v3 = vpop.eup %713  ;;  %624 = vmatprep.mubr.msk.f32.mxu1 %vm246_vm4, %v712_v2  ;;  %247 = vst.msk [vmem:[#allocation4] sm:$0xff] %vm246_vm4, %v712_v2  ;;  %v249_v4 = vsel %vm246_vm4, %v712_v2, 0.0 }
 0x158   :  { %248 = vst.msk [vmem:[#allocation4 + $0x8] sm:$0xff] %vm246_vm4, %v714_v3  ;;  %v252_v5 = vsel %vm246_vm4, %v714_v3, 0.0  ;;  %625 = vmatmul.mubr.msk.f32.vlgmr.msra.gmra.mrb[2].mxu1 %vm246_vm4, %v714_v3  ;;  %250 = vadd.xlane.f32.xlu0 %v249_v4 }
 0x159   :  { %253 = vadd.xlane.f32.xlu1 %v252_v5  ;;  %628 = vmatpush3.msk.msra.mxu1 %vm359_vm5, %v345_v6 }
 0x1e5   :  { %v251_v23 = vpop.xlane.xlu0 %250 }
 0x1e6   :  { %v254_v22 = vpop.xlane.xlu1 %253 }
 0x1e7   :  { %715 = vrcp.f32 %v254_v22 }
 0x1e8   :  { %717 = vrcp.f32 %v251_v23 }
 0x1f1   :  { %v716_v24 = vpop.eup %715 }
 0x1f2   :  { %v718_v26 = vpop.eup %717 }
 0x22b   :  { %v626_v25 = vpop.f32.mrb[2].mxu1 }
 0x22c   :  { %v341_v27 = vmul.f32 %v716_v24, %v626_v25  ;;  %v329_v28 = vpop.f32.mrb[3].mxu1 }
 0x22d   :  { %v340_v29 = vmul.f32 %v718_v26, %v329_v28 }
 0x22e   :  { %344 = vst.msk [vmem:[%s926_s10 + $0x8] sm:$0xff] %vm342_vm6, %v341_v27 }
 0x22f   :  { %343 = vst.msk [vmem:[%s926_s10] sm:$0xff] %vm342_vm6, %v340_v29  ;;  %629 = vmatprep.mubr.msk.f32.mxu1 %vm342_vm6, %v340_v29 }
 0x230   :  { %630 = vmatmul.mubr.msk.f32.vlgmr.msra.gmra.mrb[4].mxu1 %vm342_vm6, %v341_v27 }
 0x303   :  { %v631_v35 = vpop.f32.mrb[4].mxu1 }
 0x304   :  { %v435_v36 = vadd.f32 %v631_v35, %v579_v34  ;;  %v429_v37 = vpop.f32.mrb[5].mxu1 }
 0x305   :  { %v430_v38 = vadd.f32 %v579_v34, %v429_v37 }
 0x306   :  { %v439_v40 = vmax.f32 %v435_v36, 0.0 }
 0x307   :  { %v438_v39 = vmax.f32 %v430_v38, 0.0 }
 0x309   :  { %658 = vmatprep.mubr.msk.f32.mxu0 %vm460_vm8, %v438_v39 }
 0x30a   :  { %659 = vmatmul.mubr.msk.f32.vlgmr.msra.gmra.mrb[0].mxu0 %vm460_vm8, %v439_v40 }
 0x30b   :  { %730 = shalt.err (!%p727_p4)
}
 0x30c   :  { %s731_s5 = scalar_lea.hbm %s925_s9, 256 }
 0x30d   :  { %p732_p5 = scmp.ne.s32.totalorder %s925_s9, %s731_s5  ;;  %p735_p6 = scmp.lt.u32.totalorder %s731_s5, %s925_s9 }
 0x30f   :  { %p737_p7 = pnand %p735_p6, %p732_p5 }
 0x311   :  { %740 = shalt.err (!%p737_p7)
}
 0x312   :  { %s745_s24 = smov 128   ;;  %s746_s25 = smov 8   ;;  %v583_v41 = vld [vmem:[#allocation3] ss:$0 sm:$0xff] }
 0x313   :  { %559 = dma.vmem_to_hbm [thread:$0]  %s554_s18, 256, %s925_s9, [#allocation5], %s745_s24, %s745_s24, %s746_s25  }
 0x3dd   :  { %v660_v42 = vpop.f32.mrb[0].mxu0 }
 0x3de   :  { %v543_v43 = vadd.f32 %v660_v42, %v583_v41  ;;  %v537_v44 = vpop.f32.mrb[1].mxu0 }
 0x3df   :  { %v538_v45 = vadd.f32 %v583_v41, %v537_v44 }
 0x3e0   :  { %547 = vst.msk [vmem:[%s927_s11 + $0x8] sm:$0xff] %vm342_vm6, %v543_v43 }
 0x3e1   :  { %546 = vst.msk [vmem:[%s927_s11] sm:$0xff] %vm342_vm6, %v538_v45 }
 0x3e2   :  { %741 = dma.done.wait [#allocation5], 256  }
 0x3e3   :  { %742 = vsyncadd [#allocation5], 4294967040 }
 0x3e4   :  { %571 = vsyncpa [#allocation5], 1 }

// kernel: deep_idw_forward.2
= control target key start
LH: loop header
LB: loop body
LE: loop exit
PB: predicated region body
PF: predicated region fallthrough
CT: control target
= control target key end

     0   :  { %s2354_s3 = smov 4   ;;  %s2355_s10 = smov 6   ;;  %vm170_vm0 = vcmask 1043456   ;;  %vm163_vm1 = vcmask 31744   ;;  %vm271_vm2 = vcmask 818176   ;;  %vm481_vm3 = vcmask 1042432   ;;  %s2842_s0 = inlined_call_operand.smem [shape: u32[41], index: -1, kind: input, shape index: {}] }
   0x1   :  { %s1683_s6 = sld [smem:[%s2842_s0 + %s2354_s3]]   ;;  %s2356_s14 = smov 8   ;;  %vm683_vm4 = vcmask 1040384   ;;  %vm676_vm5 = vcmask 7168   ;;  %vm474_vm6 = vcmask 23552   ;;  %vm1336_vm7 = vcmask 523264  }
   0x2   :  { %s1_s9 = sld [smem:[%s2842_s0]]   ;;  %s2357_s18 = smov 5  }
   0x3   :  { %s2412_s13 = sld [smem:[%s2842_s0 + %s2355_s10]]   ;;  %s2358_s22 = smov 10  }
   0x4   :  { %s2417_s17 = sld [smem:[%s2842_s0 + %s2356_s14]]   ;;  %s2359_s26 = smov 14  }
   0x5   :  { %s1684_s21 = sld [smem:[%s2842_s0 + %s2357_s18]]   ;;  %s2360_s30 = smov 1  }
   0x6   :  { %s1689_s25 = sld [smem:[%s2842_s0 + %s2358_s22]]   ;;  %s2361_s4 = smov 12  }
   0x7   :  { %v155_v0 = vld [vmem:[%s1683_s6] sm:$0xf]  ;;  %s1693_s29 = sld [smem:[%s2842_s0 + %s2359_s26]]   ;;  %s2362_s8 = smov 7  }
   0x8   :  { %v2419_v1 = vld [vmem:[%s1_s9] sm:$0xff]  ;;  %v2421_v2 = vld [vmem:[%s1_s9 + $0x8] sm:$0xff]  ;;  %1871 = vmatprep.subr.msk.mxu0 %vm170_vm0, %v155_v0  ;;  %s1680_s3 = sld [smem:[%s2842_s0 + %s2360_s30]]   ;;  %s2363_s12 = smov 9  }
   0x9   :  { %1873 = vmatprep.mubr.msk.f32.mxu0 %vm163_vm1, %v2419_v1  ;;  %v251_v3 = vld [vmem:[%s2412_s13] sm:$0xff]  ;;  %v252_v4 = vld [vmem:[%s2412_s13 + $0x8] sm:$0xff]  ;;  %v253_v5 = vld [vmem:[%s2412_s13 + $0x10] sm:$0xff]  ;;  %1872 = vmatpush3.msk.msra.mxu0 %vm170_vm0, %v155_v0  ;;  %s2479_s7 = sld [smem:[%s2842_s0 + %s2361_s4]]   ;;  %s2364_s16 = smov 32  }
   0xa   :  { %v2065_v6 = vpack.c.bf16 %v252_v4, %v251_v3  ;;  %v356_v7 = vld [vmem:[%s2417_s17] sm:$0xff]  ;;  %v357_v8 = vld [vmem:[%s2417_s17 + $0x8] sm:$0xff]  ;;  %v254_v9 = vld [vmem:[%s2412_s13 + $0x18] sm:$0xff]  ;;  %1874 = vmatmul.mubr.msk.f32.vlgmr.msra.gmra.mrb[0].mxu0 %vm163_vm1, %v2421_v2  ;;  %s1686_s11 = sld [smem:[%s2842_s0 + %s2362_s8]]   ;;  %s2365_s20 = smov 34  }
   0xb   :  { %v2089_v10 = vpack.c.bf16 %v357_v8, %v356_v7  ;;  %v2069_v11 = vpack.c.bf16 %v254_v9, %v253_v5  ;;  %v358_v12 = vld [vmem:[%s2417_s17 + $0x10] sm:$0xff]  ;;  %v359_v13 = vld [vmem:[%s2417_s17 + $0x18] sm:$0xff]  ;;  %v255_v14 = vld [vmem:[%s2412_s13 + $0x20] sm:$0xff]  ;;  %s1688_s15 = sld [smem:[%s2842_s0 + %s2363_s12]]   ;;  %s2366_s24 = smov 2  }
   0xc   :  { %2066 = vmatprep.subr.bf16.mxu1 %v2065_v6  ;;  %v2093_v15 = vpack.c.bf16 %v359_v13, %v358_v12  ;;  %v256_v16 = vld [vmem:[%s2412_s13 + $0x28] sm:$0xff]  ;;  %v360_v17 = vld [vmem:[%s2417_s17 + $0x20] sm:$0xff]  ;;  %v257_v21 = vld [vmem:[%s2412_s13 + $0x30] sm:$0xff]  ;;  %s1711_s19 = sld [smem:[%s2842_s0 + %s2364_s16]]   ;;  %s2367_s28 = smov 33  }
   0xd   :  { %v361_v18 = vld [vmem:[%s2417_s17 + $0x28] sm:$0xff]  ;;  %2090 = vmatprep.subr.bf16.mxu0 %v2089_v10  ;;  %2068 = vmatpush3.bf16.msra.mxu1 %v2065_v6  ;;  %v2073_v19 = vpack.c.bf16 %v256_v16, %v255_v14  ;;  %v258_v22 = vld [vmem:[%s2412_s13 + $0x38] sm:$0xff]  ;;  %v362_v23 = vld [vmem:[%s2417_s17 + $0x30] sm:$0xff]  ;;  %s1713_s23 = sld [smem:[%s2842_s0 + %s2365_s20]]   ;;  %s2369_s8 = smov 16  }
   0xe   :  { %2092 = vmatpush3.bf16.msra.mxu0 %v2089_v10  ;;  %2070 = vmatprep.subr.bf16.mxu1 %v2069_v11  ;;  %v2097_v20 = vpack.c.bf16 %v361_v18, %v360_v17  ;;  %v363_v24 = vld [vmem:[%s2417_s17 + $0x38] sm:$0xff]  ;;  %v2077_v25 = vpack.c.bf16 %v258_v22, %v257_v21  ;;  %v259_v27 = vld [vmem:[%s2412_s13 + $0x40] sm:$0xff]  ;;  %v260_v28 = vld [vmem:[%s2412_s13 + $0x48] sm:$0xff]  ;;  %s1681_s27 = sld [smem:[%s2842_s0 + %s2366_s24]]   ;;  %s2370_s12 = smov 18  }
   0xf   :  { %2094 = vmatprep.subr.bf16.mxu0 %v2093_v15  ;;  %v2101_v26 = vpack.c.bf16 %v363_v24, %v362_v23  ;;  %v364_v29 = vld [vmem:[%s2417_s17 + $0x40] sm:$0xff]  ;;  %v365_v30 = vld [vmem:[%s2417_s17 + $0x48] sm:$0xff]  ;;  %v2081_v31 = vpack.c.bf16 %v260_v28, %v259_v27  ;;  %v261_v33 = vld [vmem:[%s2412_s13 + $0x50] sm:$0xff]  ;;  %s1712_s2 = sld [smem:[%s2842_s0 + %s2367_s28]]  }
  0x10   :  { %v2105_v32 = vpack.c.bf16 %v365_v30, %v364_v29  ;;  %v262_v34 = vld [vmem:[%s2412_s13 + $0x58] sm:$0xff]  ;;  %v366_v35 = vld [vmem:[%s2417_s17 + $0x50] sm:$0xff]  ;;  %v263_v39 = vld [vmem:[%s2412_s13 + $0x60] sm:$0xf] }
  0x11   :  { %2072 = vmatpush3.bf16.msra.mxu1 %v2069_v11  ;;  %v2085_v36 = vpack.c.bf16 %v262_v34, %v261_v33  ;;  %v367_v37 = vld [vmem:[%s2417_s17 + $0x58] sm:$0xff]  ;;  %v368_v40 = vld [vmem:[%s2417_s17 + $0x60] sm:$0xf]  ;;  %v667_v51 = vld [vmem:[%s1680_s3 + $0x8] sm:$0xff] }
  0x12   :  { %2096 = vmatpush3.bf16.msra.mxu0 %v2093_v15  ;;  %2074 = vmatprep.subr.bf16.mxu1 %v2073_v19  ;;  %v2109_v38 = vpack.c.bf16 %v367_v37, %v366_v35  ;;  %v1720_v41 = vld [vmem:[%s1684_s21] ss:$0 sm:$0xff]  ;;  %v563_v53 = vld [vmem:[%s2479_s7 + $0x8] sm:$0xff]  ;;  %v564_v17 = vld [vmem:[%s2479_s7 + $0x10] sm:$0xff] }
  0x13   :  { %2098 = vmatprep.subr.bf16.mxu0 %v2097_v20  ;;  %v466_v48 = vld [vmem:[%s1689_s25] sm:$0x7]  ;;  %v565_v18 = vld [vmem:[%s2479_s7 + $0x18] sm:$0xff]  ;;  %v567_v23 = vld [vmem:[%s2479_s7 + $0x28] sm:$0xff] }
  0x14   :  { %v668_v49 = vld [vmem:[%s1693_s29] sm:$0x1]  ;;  %v461_v10 = vld [vmem:[%s1681_s27 + $0x8] sm:$0xff]  ;;  %v2117_v21 = vpack.c.bf16 %v565_v18, %v564_v17 }
  0x15   :  { %2076 = vmatpush3.bf16.msra.mxu1 %v2073_v19  ;;  %v666_v50 = vld [vmem:[%s1680_s3] sm:$0xff]  ;;  %s2368_s3 = smov 31   ;;  %v571_v29 = vld [vmem:[%s2479_s7 + $0x48] sm:$0xff] }
  0x16   :  { %2100 = vmatpush3.bf16.msra.mxu0 %v2097_v20  ;;  %2078 = vmatprep.subr.bf16.mxu1 %v2077_v25  ;;  %v562_v52 = vld [vmem:[%s2479_s7] sm:$0xff]  ;;  %s1710_s6 = sld [smem:[%s2842_s0 + %s2368_s3]]  }
  0x17   :  { %2102 = vmatprep.subr.bf16.mxu0 %v2101_v26  ;;  %v2113_v54 = vpack.c.bf16 %v563_v53, %v562_v52  ;;  %v1724_v55 = vld [vmem:[%s1686_s11] ss:$0 sm:$0xff]  ;;  %s2529_s11 = sld [smem:[%s2842_s0 + %s2369_s8]]  }
  0x18   :  { %v1728_v56 = vld [vmem:[%s1688_s15] ss:$0 sm:$0xff]  ;;  %s2536_s15 = sld [smem:[%s2842_s0 + %s2370_s12]]  }
  0x19   :  { %2080 = vmatpush3.bf16.msra.mxu1 %v2077_v25  ;;  %v460_v12 = vld [vmem:[%s1681_s27] sm:$0xff]  ;;  %v568_v25 = vld [vmem:[%s2479_s7 + $0x30] sm:$0xff]  ;;  %s2375_s27 = smov 17  }
  0x1a   :  { %2104 = vmatpush3.bf16.msra.mxu0 %v2101_v26  ;;  %2082 = vmatprep.subr.bf16.mxu1 %v2081_v31  ;;  %v566_v22 = vld [vmem:[%s2479_s7 + $0x20] sm:$0xff]  ;;  %v569_v26 = vld [vmem:[%s2479_s7 + $0x38] sm:$0xff]  ;;  %s1696_s1 = sld [smem:[%s2842_s0 + %s2375_s27]]  }
  0x1b   :  { %2106 = vmatprep.subr.bf16.mxu0 %v2105_v32  ;;  %v2121_v24 = vpack.c.bf16 %v567_v23, %v566_v22  ;;  %v2125_v27 = vpack.c.bf16 %v569_v26, %v568_v25  ;;  %v570_v28 = vld [vmem:[%s2479_s7 + $0x40] sm:$0xff] }
  0x1c   :  { %v2129_v30 = vpack.c.bf16 %v571_v29, %v570_v28  ;;  %v574_v37 = vld [vmem:[%s2479_s7 + $0x60] sm:$0xf] }
  0x1d   :  { %2084 = vmatpush3.bf16.msra.mxu1 %v2081_v31  ;;  %v572_v31 = vld [vmem:[%s2479_s7 + $0x50] sm:$0xff]  ;;  %v764_v34 = vld [vmem:[%s2529_s11] sm:$0xff]  ;;  %v765_v35 = vld [vmem:[%s2529_s11 + $0x8] sm:$0xff] }
  0x1e   :  { %2108 = vmatpush3.bf16.msra.mxu0 %v2105_v32  ;;  %2086 = vmatprep.subr.bf16.mxu1 %v2085_v36  ;;  %v573_v32 = vld [vmem:[%s2479_s7 + $0x58] sm:$0xff]  ;;  %s2371_s7 = smov 15   ;;  %v876_v18 = vld [vmem:[%s2536_s15 + $0x40] sm:$0xff] }
  0x1f   :  { %2110 = vmatprep.subr.bf16.mxu0 %v2109_v38  ;;  %v2133_v33 = vpack.c.bf16 %v573_v32, %v572_v31  ;;  %s1694_s18 = sld [smem:[%s2842_s0 + %s2371_s7]]   ;;  %v879_v22 = vld [vmem:[%s2536_s15 + $0x58] sm:$0xff] }
  0x20   :  { %v87_v28 = vstv %s1696_s1  ;;  %s2383_s1 = smov 25  }
  0x21   :  { %2088 = vmatpush3.bf16.msra.mxu1 %v2085_v36  ;;  %v2137_v36 = vpack.c.bf16 %v765_v35, %v764_v34  ;;  %88 = vst [vmem:[#allocation2] sm:$0x1] %v87_v28  ;;  %s1704_s4 = sld [smem:[%s2842_s0 + %s2383_s1]]  }
  0x22   :  { %2112 = vmatpush3.bf16.msra.mxu0 %v2109_v38  ;;  %1900 = vmatprep.subr.msk.mxu1 %vm170_vm0, %v263_v39  ;;  %v868_v38 = vld [vmem:[%s2536_s15] sm:$0xff] }
  0x23   :  { %1929 = vmatprep.subr.msk.mxu0 %vm170_vm0, %v368_v40 }
  0x25   :  { %1901 = vmatpush3.msk.msra.mxu1 %vm170_vm0, %v263_v39  ;;  %v869_v39 = vld [vmem:[%s2536_s15 + $0x8] sm:$0xff] }
  0x26   :  { %1930 = vmatpush3.msk.msra.mxu0 %vm170_vm0, %v368_v40  ;;  %1968 = vmatprep.subr.msk.mxu1 %vm683_vm4, %v668_v49  ;;  %v2161_v40 = vpack.c.bf16 %v869_v39, %v868_v38 }
  0x27   :  { %1934 = vmatprep.subr.msk.mxu0 %vm481_vm3, %v466_v48 }
  0xdd   :  { %v1875_v42 = vpop.f32.mrb[0].mxu0 }
  0xde   :  { %v246_v43 = vadd.f32 %v1875_v42, %v1720_v41  ;;  %v240_v44 = vpop.f32.mrb[1].mxu0  ;;  %v767_v42 = vld [vmem:[%s2529_s11 + $0x18] sm:$0xff] }
  0xdf   :  { %v241_v45 = vadd.f32 %v1720_v41, %v240_v44  ;;  %v766_v41 = vld [vmem:[%s2529_s11 + $0x10] sm:$0xff]  ;;  %v768_v44 = vld [vmem:[%s2529_s11 + $0x20] sm:$0xff] }
  0xe0   :  { %v250_v47 = vmax.f32 %v246_v43, 0.0  ;;  %v2141_v43 = vpack.c.bf16 %v767_v42, %v766_v41 }
  0xe1   :  { %v249_v46 = vmax.f32 %v241_v45, 0.0  ;;  %v769_v45 = vld [vmem:[%s2529_s11 + $0x28] sm:$0xff] }
  0xe3   :  { %1902 = vmatprep.mubr.msk.f32.mxu1 %vm271_vm2, %v249_v46  ;;  %1931 = vmatprep.mubr.msk.f32.mxu0 %vm271_vm2, %v249_v46  ;;  %v2145_v46 = vpack.c.bf16 %v769_v45, %v768_v44 }
  0xe4   :  { %1903 = vmatmul.mubr.msk.f32.vlgmr.msra.gmra.mrb[0].mxu1 %vm271_vm2, %v250_v47  ;;  %1932 = vmatmul.mubr.msk.f32.vlgmr.msra.gmra.mrb[2].mxu0 %vm271_vm2, %v250_v47  ;;  %v770_v47 = vld [vmem:[%s2529_s11 + $0x30] sm:$0xff] }
  0xe5   :  { %1935 = vmatpush3.msk.msra.mxu0 %vm481_vm3, %v466_v48  ;;  %1970 = vmatprep.mubr.msk.f32.mxu1 %vm676_vm5, %v666_v50  ;;  %v771_v48 = vld [vmem:[%s2529_s11 + $0x38] sm:$0xff]  ;;  %v772_v50 = vld [vmem:[%s2529_s11 + $0x40] sm:$0xff] }
  0xe6   :  { %1969 = vmatpush3.msk.msra.mxu1 %vm683_vm4, %v668_v49  ;;  %2114 = vmatprep.subr.bf16.mxu0 %v2113_v54  ;;  %v2149_v49 = vpack.c.bf16 %v771_v48, %v770_v47 }
  0xe7   :  { %2138 = vmatprep.subr.bf16.mxu1 %v2137_v36 }
  0xe8   :  { %1971 = vmatmul.mubr.msk.f32.vlgmr.msra.gmra.mrb[2].mxu1 %vm676_vm5, %v667_v51  ;;  %v773_v51 = vld [vmem:[%s2529_s11 + $0x48] sm:$0xff] }
  0xe9   :  { %2140 = vmatpush3.bf16.msra.mxu1 %v2137_v36  ;;  %v2153_v52 = vpack.c.bf16 %v773_v51, %v772_v50 }
  0xea   :  { %2142 = vmatprep.subr.bf16.mxu1 %v2141_v43 }
  0xed   :  { %2144 = vmatpush3.bf16.msra.mxu1 %v2141_v43 }
  0xee   :  { %2146 = vmatprep.subr.bf16.mxu1 %v2145_v46 }
  0xf1   :  { %2148 = vmatpush3.bf16.msra.mxu1 %v2145_v46 }
  0xf2   :  { %2150 = vmatprep.subr.bf16.mxu1 %v2149_v49 }
  0xf5   :  { %2152 = vmatpush3.bf16.msra.mxu1 %v2149_v49 }
  0xf6   :  { %2154 = vmatprep.subr.bf16.mxu1 %v2153_v52 }
  0xf9   :  { %2156 = vmatpush3.bf16.msra.mxu1 %v2153_v52 }
 0x1b7   :  { %v1904_v57 = vpop.f32.mrb[0].mxu1  ;;  %v1933_v58 = vpop.f32.mrb[2].mxu0 }
 0x1b8   :  { %v353_v59 = vadd.f32 %v1904_v57, %v1724_v55  ;;  %v451_v60 = vadd.f32 %v1933_v58, %v1728_v56  ;;  %v347_v61 = vpop.f32.mrb[1].mxu1  ;;  %v445_v62 = vpop.f32.mrb[3].mxu0  ;;  %v1740_v58 = vld [vmem:[%s1694_s18] ss:$0 sm:$0xff]  ;;  %s2380_s18 = smov 22  }
 0x1b9   :  { %v348_v63 = vadd.f32 %v1724_v55, %v347_v61  ;;  %v446_v0 = vadd.f32 %v1728_v56, %v445_v62  ;;  %v774_v55 = vld [vmem:[%s2529_s11 + $0x50] sm:$0xff]  ;;  %v775_v56 = vld [vmem:[%s2529_s11 + $0x58] sm:$0xff]  ;;  %v776_v61 = vld [vmem:[%s2529_s11 + $0x60] sm:$0xf]  ;;  %s2378_s11 = smov 26   ;;  %s2640_s21 = sld [smem:[%s2842_s0 + %s2380_s18]]  }
 0x1ba   :  { %1603 = vst.msk [vmem:[%s1711_s19 + $0x8] sm:$0xff] %vm474_vm6, %v353_v59  ;;  %v455_v3 = vmul.f32 0.5, %v451_v60  ;;  %v1606_v4 = vmul.f32 1.442695, %v451_v60  ;;  %1611 = vst.msk [vmem:[%s1713_s23 + $0x8] sm:$0xff] %vm474_vm6, %v451_v60  ;;  %v2157_v57 = vpack.c.bf16 %v775_v56, %v774_v55  ;;  %s2612_s14 = sld [smem:[%s2842_s0 + %s2378_s11]]   ;;  %s2397_s18 = smov 40  }
 0x1bb   :  { %1602 = vst.msk [vmem:[%s1711_s19] sm:$0xff] %vm474_vm6, %v348_v63  ;;  %v454_v5 = vmul.f32 0.5, %v446_v0  ;;  %v1604_v6 = vmul.f32 1.442695, %v446_v0  ;;  %1610 = vst.msk [vmem:[%s1713_s23] sm:$0xff] %vm474_vm6, %v446_v0  ;;  %v1972_v53 = vpop.f32.mrb[2].mxu1 }
 0x1bc   :  { %v458_v7 = vmul.f32 1.442695, %v455_v3  ;;  %2338 = vpow2.f32 %v1606_v4  ;;  %2158 = vmatprep.subr.bf16.mxu1 %v2157_v57  ;;  %s2372_s19 = smov 11   ;;  %s2373_s23 = smov 24  }
 0x1bd   :  { %v456_v8 = vmul.f32 1.442695, %v454_v5  ;;  %2340 = vpow2.f32 %v1604_v6  ;;  %2160 = vmatpush3.bf16.msra.mxu1 %v2157_v57  ;;  %s1690_s22 = sld [smem:[%s2842_s0 + %s2372_s19]]  }
 0x1be   :  { %2342 = vpow2.f32 %v458_v7  ;;  %1997 = vmatprep.subr.msk.mxu1 %vm170_vm0, %v776_v61  ;;  %v870_v7 = vld [vmem:[%s2536_s15 + $0x10] sm:$0xff]  ;;  %s1703_s26 = sld [smem:[%s2842_s0 + %s2373_s23]]  }
 0x1bf   :  { %2344 = vpow2.f32 %v456_v8  ;;  %v871_v8 = vld [vmem:[%s2536_s15 + $0x18] sm:$0xff] }
 0x1c0   :  { %v1279_v34 = vld [vmem:[%s2612_s14 + $0x18] sm:$0xff]  ;;  %v1276_v35 = vld [vmem:[%s2612_s14] sm:$0xff]  ;;  %v1282_v44 = vld [vmem:[%s2612_s14 + $0x30] sm:$0xff] }
 0x1c1   :  { %1998 = vmatpush3.msk.msra.mxu1 %vm170_vm0, %v776_v61  ;;  %v1283_v41 = vld [vmem:[%s2612_s14 + $0x38] sm:$0xff]  ;;  %v1280_v43 = vld [vmem:[%s2612_s14 + $0x20] sm:$0xff]  ;;  %v1285_v46 = vld [vmem:[%s2612_s14 + $0x48] sm:$0xff] }
 0x1c2   :  { %v2215_v45 = vpack.c.bf16 %v1282_v44, %v1280_v43  ;;  %v1287_v47 = vld [vmem:[%s2612_s14 + $0x58] sm:$0xff]  ;;  %v1284_v48 = vld [vmem:[%s2612_s14 + $0x40] sm:$0xff]  ;;  %v1286_v50 = vld [vmem:[%s2612_s14 + $0x50] sm:$0xff] }
 0x1c3   :  { %v1732_v0 = vld [vmem:[%s1690_s22] ss:$0 sm:$0xff]  ;;  %v2217_v49 = vpack.c.bf16 %v1287_v47, %v1285_v46  ;;  %v1289_v51 = vld [vmem:[%s2612_s14 + $0x68] sm:$0xff]  ;;  %v1291_v52 = vld [vmem:[%s2612_s14 + $0x78] sm:$0xff]  ;;  %s2381_s22 = smov 13  }
 0x1c4   :  { %v1176_v25 = vld [vmem:[%s1703_s26] sm:$0xff]  ;;  %v1290_v56 = vld [vmem:[%s2612_s14 + $0x70] sm:$0xff]  ;;  %v1293_v57 = vld [vmem:[%s2612_s14 + $0x88] sm:$0xff]  ;;  %s1692_s25 = sld [smem:[%s2842_s0 + %s2381_s22]]   ;;  %s2382_s26 = smov 30  }
 0x1c5   :  { %v1190_v26 = vcombine.high %v1176_v25, %v1176_v25  ;;  %v1288_v55 = vld [vmem:[%s2612_s14 + $0x60] sm:$0xff]  ;;  %v1313_v28 = vld [vmem:[%s2612_s14 + $0x128] sm:$0xff]  ;;  %s1709_s29 = sld [smem:[%s2842_s0 + %s2382_s26]]   ;;  %s2389_s22 = smov 23  }
 0x1c6   :  { %v2339_v9 = vpop.eup %2338  ;;  %v1292_v61 = vld [vmem:[%s2612_s14 + $0x80] sm:$0xff]  ;;  %s2390_s26 = smov 27  }
 0x1c7   :  { %v2341_v11 = vpop.eup %2340  ;;  %1609 = vst.msk [vmem:[%s1712_s2 + $0x8] sm:$0xff] %vm474_vm6, %v2339_v9  ;;  %v1320_v44 = vld [vmem:[%s2612_s14 + $0x160] sm:$0xff] }
 0x1c8   :  { %v2343_v13 = vpop.eup %2342  ;;  %1608 = vst.msk [vmem:[%s1712_s2] sm:$0xff] %vm474_vm6, %v2341_v11  ;;  %v2165_v11 = vpack.c.bf16 %v871_v8, %v870_v7  ;;  %s2376_s2 = smov 19   ;;  %v1301_v7 = vld [vmem:[%s2612_s14 + $0xc8] sm:$0xff]  ;;  %v1303_v8 = vld [vmem:[%s2612_s14 + $0xd8] sm:$0xff] }
 0x1c9   :  { %v2345_v14 = vpop.eup %2344  ;;  %v463_v15 = vmul.f32 %v2343_v13, %v461_v10  ;;  %v873_v13 = vld [vmem:[%s2536_s15 + $0x28] sm:$0xff]  ;;  %s1698_s5 = sld [smem:[%s2842_s0 + %s2376_s2]]  }
 0x1ca   :  { %v462_v16 = vmul.f32 %v2345_v14, %v460_v12  ;;  %v872_v12 = vld [vmem:[%s2536_s15 + $0x20] sm:$0xff] }
 0x1cb   :  { %v465_v19 = vadd.f32 %v463_v15, %v353_v59  ;;  %v759_v59 = vadd.f32 %v1972_v53, %v1740_v58  ;;  %v2169_v14 = vpack.c.bf16 %v873_v13, %v872_v12  ;;  %v874_v15 = vld [vmem:[%s2536_s15 + $0x30] sm:$0xff]  ;;  %v2219_v53 = vpack.c.bf16 %v1286_v50, %v1284_v48  ;;  %v1300_v12 = vld [vmem:[%s2612_s14 + $0xc0] sm:$0xff] }
 0x1cc   :  { %v464_v20 = vadd.f32 %v462_v16, %v348_v63  ;;  %v875_v16 = vld [vmem:[%s2536_s15 + $0x38] sm:$0xff]  ;;  %v1302_v13 = vld [vmem:[%s2612_s14 + $0xd0] sm:$0xff]  ;;  %v1736_v47 = vld [vmem:[%s1692_s25] ss:$0 sm:$0xff]  ;;  %s1702_s25 = sld [smem:[%s2842_s0 + %s2389_s22]]  }
 0x1cd   :  { %1601 = vst.msk [vmem:[%s1710_s6 + $0x8] sm:$0xff] %vm474_vm6, %v465_v19  ;;  %v763_v62 = vmax.f32 %v759_v59, 0.0  ;;  %v2173_v17 = vpack.c.bf16 %v875_v16, %v874_v15  ;;  %v2223_v59 = vpack.c.bf16 %v1290_v56, %v1288_v55  ;;  %v1305_v15 = vld [vmem:[%s2612_s14 + $0xe8] sm:$0xff]  ;;  %v1307_v16 = vld [vmem:[%s2612_s14 + $0xf8] sm:$0xff]  ;;  %v1177_v56 = vld [vmem:[%s1704_s4] sm:$0x3]  ;;  %s1719_s22 = sld [smem:[%s2842_s0 + %s2397_s18]]  }
 0x1ce   :  { %1936 = vmatprep.mubr.msk.f32.mxu0 %vm474_vm6, %v464_v20  ;;  %1600 = vst.msk [vmem:[%s1710_s6] sm:$0xff] %vm474_vm6, %v464_v20  ;;  %s2377_s6 = smov 37   ;;  %s2392_s4 = smov 28  }
 0x1cf   :  { %1937 = vmatmul.mubr.msk.f32.vlgmr.msra.gmra.mrb[4].mxu0 %vm474_vm6, %v465_v19  ;;  %v877_v19 = vld [vmem:[%s2536_s15 + $0x48] sm:$0xff]  ;;  %v89_v29 = vstv %s1698_s5  ;;  %s1716_s10 = sld [smem:[%s2842_s0 + %s2377_s6]]   ;;  %s2384_s5 = smov 39  }
 0x1d0   :  { %2116 = vmatpush3.bf16.msra.mxu0 %v2113_v54  ;;  %v753_v54 = vpop.f32.mrb[3].mxu1  ;;  %v2177_v20 = vpack.c.bf16 %v877_v19, %v876_v18  ;;  %90 = vst [vmem:[#allocation3] sm:$0x1] %v89_v29  ;;  %v2235_v18 = vpack.c.bf16 %v1302_v13, %v1300_v12  ;;  %v2237_v19 = vpack.c.bf16 %v1307_v16, %v1305_v15  ;;  %v1315_v29 = vld [vmem:[%s2612_s14 + $0x138] sm:$0xff]  ;;  %s1718_s9 = sld [smem:[%s2842_s0 + %s2384_s5]]  }
 0x1d1   :  { %2118 = vmatprep.subr.bf16.mxu0 %v2117_v21  ;;  %v754_v60 = vadd.f32 %v1740_v58, %v753_v54  ;;  %v2221_v54 = vpack.c.bf16 %v1291_v52, %v1289_v51  ;;  %v1295_v58 = vld [vmem:[%s2612_s14 + $0x98] sm:$0xff]  ;;  %v1179_v52 = vlaneseq  ;;  %s2761_s8 = sld [smem:[%s2842_s0 + %s2392_s4]]  }
 0x1d3   :  { %v762_v63 = vmax.f32 %v754_v60, 0.0  ;;  %v2225_v60 = vpack.c.bf16 %v1295_v58, %v1293_v57 }
 0x1d4   :  { %2120 = vmatpush3.bf16.msra.mxu0 %v2117_v21  ;;  %v878_v21 = vld [vmem:[%s2536_s15 + $0x50] sm:$0xff] }
 0x1d5   :  { %2122 = vmatprep.subr.bf16.mxu0 %v2121_v24  ;;  %1999 = vmatprep.mubr.msk.f32.mxu1 %vm271_vm2, %v762_v63  ;;  %v2181_v23 = vpack.c.bf16 %v879_v22, %v878_v21  ;;  %v1306_v21 = vld [vmem:[%s2612_s14 + $0xf0] sm:$0xff]  ;;  %v1309_v22 = vld [vmem:[%s2612_s14 + $0x108] sm:$0xff] }
 0x1d6   :  { %2000 = vmatmul.mubr.msk.f32.vlgmr.msra.gmra.mrb[4].mxu1 %vm271_vm2, %v763_v62 }
 0x1d7   :  { %v1748_v55 = vld [vmem:[#allocation3] ss:$0 sm:$0xff] }
 0x1d8   :  { %2124 = vmatpush3.bf16.msra.mxu0 %v2121_v24  ;;  %v880_v24 = vld [vmem:[%s2536_s15 + $0x60] sm:$0xf]  ;;  %s2379_s15 = smov 20  }
 0x1d9   :  { %2126 = vmatprep.subr.bf16.mxu0 %v2125_v27  ;;  %s1699_s17 = sld [smem:[%s2842_s0 + %s2379_s15]]  }
 0x1dc   :  { %2128 = vmatpush3.bf16.msra.mxu0 %v2125_v27  ;;  %v2374_v27 = vmov 0.0  }
 0x1dd   :  { %2130 = vmatprep.subr.bf16.mxu0 %v2129_v30 }
 0x1df   :  { %v978_v39 = vld [vmem:[%s1699_s17] sm:$0x1]  ;;  %s2387_s17 = smov 36  }
 0x1e0   :  { %2132 = vmatpush3.bf16.msra.mxu0 %v2129_v30  ;;  %2031 = vmatprep.subr.msk.mxu1 %vm683_vm4, %v978_v39  ;;  %s1715_s20 = sld [smem:[%s2842_s0 + %s2387_s17]]   ;;  %s2396_s17 = smov 126  }
 0x1e1   :  { %2134 = vmatprep.subr.bf16.mxu0 %v2133_v33  ;;  %2032 = vmatpush3.msk.msra.mxu1 %vm683_vm4, %v978_v39  ;;  %v1318_v39 = vld [vmem:[%s2612_s14 + $0x150] sm:$0xff] }
 0x1e4   :  { %2136 = vmatpush3.bf16.msra.mxu0 %v2133_v33  ;;  %v1277_v33 = vld [vmem:[%s2612_s14 + $0x8] sm:$0xff] }
 0x1e5   :  { %1963 = vmatprep.subr.msk.mxu0 %vm170_vm0, %v574_v37  ;;  %v2209_v36 = vpack.c.bf16 %v1279_v34, %v1277_v33  ;;  %v1314_v33 = vld [vmem:[%s2612_s14 + $0x130] sm:$0xff]  ;;  %v1317_v34 = vld [vmem:[%s2612_s14 + $0x148] sm:$0xff] }
 0x1e8   :  { %1964 = vmatpush3.msk.msra.mxu0 %vm170_vm0, %v574_v37  ;;  %v1278_v37 = vld [vmem:[%s2612_s14 + $0x10] sm:$0xff] }
 0x1e9   :  { %2162 = vmatprep.subr.bf16.mxu0 %v2161_v40  ;;  %v2211_v38 = vpack.c.bf16 %v1278_v37, %v1276_v35  ;;  %v1319_v35 = vld [vmem:[%s2612_s14 + $0x158] sm:$0xff] }
 0x1ea   :  { %v2249_v37 = vpack.c.bf16 %v1319_v35, %v1317_v34  ;;  %v1076_v34 = vld [vmem:[%s2640_s21 + $0x20] sm:$0xff]  ;;  %v1077_v35 = vld [vmem:[%s2640_s21 + $0x28] sm:$0xff] }
 0x2a2   :  { %v1938_v3 = vpop.f32.mrb[4].mxu0 }
 0x2a3   :  { %v557_v4 = vadd.f32 %v1938_v3, %v1732_v0  ;;  %v551_v5 = vpop.f32.mrb[5].mxu0 }
 0x2a4   :  { %v552_v6 = vadd.f32 %v1732_v0, %v551_v5  ;;  %v1299_v0 = vld [vmem:[%s2612_s14 + $0xb8] sm:$0xff]  ;;  %v1296_v5 = vld [vmem:[%s2612_s14 + $0xa0] sm:$0xff] }
 0x2a5   :  { %v561_v10 = vmax.f32 %v557_v4, 0.0 }
 0x2a6   :  { %v560_v9 = vmax.f32 %v552_v6, 0.0  ;;  %v1298_v6 = vld [vmem:[%s2612_s14 + $0xb0] sm:$0xff] }
 0x2a8   :  { %1965 = vmatprep.mubr.msk.f32.mxu0 %vm271_vm2, %v560_v9  ;;  %v2231_v9 = vpack.c.bf16 %v1298_v6, %v1296_v5 }
 0x2a9   :  { %1966 = vmatmul.mubr.msk.f32.vlgmr.msra.gmra.mrb[6].mxu0 %vm271_vm2, %v561_v10  ;;  %v1072_v10 = vld [vmem:[%s2640_s21] sm:$0xff] }
 0x2aa   :  { %2164 = vmatpush3.bf16.msra.mxu0 %v2161_v40  ;;  %2028 = vmatprep.mubr.msk.f32.mxu0 %vm271_vm2, %v762_v63  ;;  %v1281_v40 = vld [vmem:[%s2612_s14 + $0x28] sm:$0xff] }
 0x2ab   :  { %2166 = vmatprep.subr.bf16.mxu0 %v2165_v11  ;;  %v2213_v42 = vpack.c.bf16 %v1283_v41, %v1281_v40  ;;  %v1297_v63 = vld [vmem:[%s2612_s14 + $0xa8] sm:$0xff]  ;;  %v1323_v41 = vld [vmem:[%s2612_s14 + $0x178] sm:$0xff] }
 0x2ac   :  { %v2229_v4 = vpack.c.bf16 %v1299_v0, %v1297_v63  ;;  %v1321_v40 = vld [vmem:[%s2612_s14 + $0x168] sm:$0xff] }
 0x2ad   :  { %v2253_v43 = vpack.c.bf16 %v1323_v41, %v1321_v40  ;;  %v1082_v41 = vld [vmem:[%s2640_s21 + $0x50] sm:$0xff] }
 0x2ae   :  { %2168 = vmatpush3.bf16.msra.mxu0 %v2165_v11  ;;  %v2233_v11 = vpack.c.bf16 %v1303_v8, %v1301_v7 }
 0x2af   :  { %2170 = vmatprep.subr.bf16.mxu0 %v2169_v14 }
 0x2b2   :  { %2172 = vmatpush3.bf16.msra.mxu0 %v2169_v14  ;;  %v1073_v14 = vld [vmem:[%s2640_s21 + $0x8] sm:$0xff] }
 0x2b3   :  { %2174 = vmatprep.subr.bf16.mxu0 %v2173_v17 }
 0x2b6   :  { %2176 = vmatpush3.bf16.msra.mxu0 %v2173_v17  ;;  %v2656_v17 = vpack.c.bf16 %v1073_v14, %v1072_v10 }
 0x2b7   :  { %2178 = vmatprep.subr.bf16.mxu0 %v2177_v20 }
 0x2b8   :  { %2186 = vmatprep.subr.bf16.mxu1 %v2656_v17 }
 0x2ba   :  { %2180 = vmatpush3.bf16.msra.mxu0 %v2177_v20  ;;  %v1304_v20 = vld [vmem:[%s2612_s14 + $0xe0] sm:$0xff] }
 0x2bb   :  { %2182 = vmatprep.subr.bf16.mxu0 %v2181_v23 }
 0x2be   :  { %2184 = vmatpush3.bf16.msra.mxu0 %v2181_v23  ;;  %v1311_v23 = vld [vmem:[%s2612_s14 + $0x118] sm:$0xff] }
 0x2bf   :  { %2026 = vmatprep.subr.msk.mxu0 %vm170_vm0, %v880_v24 }
 0x2c2   :  { %2027 = vmatpush3.msk.msra.mxu0 %vm170_vm0, %v880_v24  ;;  %v2239_v24 = vpack.c.bf16 %v1306_v21, %v1304_v20 }
 0x2c3   :  { %2029 = vmatmul.mubr.msk.f32.vlgmr.msra.gmra.mrb[8].mxu0 %vm271_vm2, %v763_v62  ;;  %1760 = vmatprep.subr.msk.mxu0 %vm170_vm0, %v1190_v26  ;;  %v1294_v62 = vld [vmem:[%s2612_s14 + $0x90] sm:$0xff]  ;;  %v1308_v26 = vld [vmem:[%s2612_s14 + $0x100] sm:$0xff] }
 0x2c4   :  { %1761 = vmatpush1.msk.msra.mxu0 %vm170_vm0, %v1176_v25  ;;  %1259 = vmatprep.mubr.f32.mxu0 %v2374_v27  ;;  %v2227_v3 = vpack.c.bf16 %v1294_v62, %v1292_v61  ;;  %v2241_v25 = vpack.c.bf16 %v1311_v23, %v1309_v22 }
 0x2c5   :  { %2210 = vmatprep.subr.bf16.mxu0 %v2209_v36 }
 0x2c7   :  { %1762 = vmatmul.mubr.msk.f32.vlgmr.msra.gmra.mrb[10].mxu0 %vm163_vm1, %v2419_v1  ;;  %v1744_v1 = vld [vmem:[#allocation2] ss:$0 sm:$0xff] }
 0x2c8   :  { %1265 = vmatprep.mubr.f32.mxu0 %v2374_v27  ;;  %2212 = vmatpush1.bf16.msra.mxu0 %v2211_v38  ;;  %v1310_v27 = vld [vmem:[%s2612_s14 + $0x110] sm:$0xff]  ;;  %v1316_v38 = vld [vmem:[%s2612_s14 + $0x140] sm:$0xff] }
 0x2c9   :  { %2214 = vmatprep.subr.bf16.mxu0 %v2213_v42  ;;  %v2251_v42 = vpack.c.bf16 %v1318_v39, %v1316_v38  ;;  %v1080_v38 = vld [vmem:[%s2640_s21 + $0x40] sm:$0xff]  ;;  %v1081_v39 = vld [vmem:[%s2640_s21 + $0x48] sm:$0xff] }
 0x2ca   :  { %v2201_v40 = vpack.c.bf16 %v1081_v39, %v1080_v38 }
 0x2cb   :  { %1763 = vmatmul.mubr.msk.f32.gmra.mrb[12].mxu0 %vm163_vm1, %v2421_v2  ;;  %v2001_v2 = vpop.f32.mrb[4].mxu1 }
 0x2cc   :  { %v2601_v30 = vadd.f32 %v2001_v2, %v1744_v1  ;;  %v859_v31 = vpop.f32.mrb[5].mxu1  ;;  %2216 = vmatpush1.bf16.msra.mxu0 %v2215_v45  ;;  %v2245_v2 = vpack.c.bf16 %v1315_v29, %v1313_v28  ;;  %v1322_v45 = vld [vmem:[%s2612_s14 + $0x170] sm:$0xff] }
 0x2cd   :  { %v2603_v32 = vadd.f32 %v1744_v1, %v859_v31  ;;  %2218 = vmatprep.subr.bf16.mxu0 %v2217_v49  ;;  %v2243_v1 = vpack.c.bf16 %v1310_v27, %v1308_v26  ;;  %v1312_v31 = vld [vmem:[%s2612_s14 + $0x120] sm:$0xff]  ;;  %v2255_v46 = vpack.c.bf16 %v1322_v45, %v1320_v44  ;;  %s2386_s14 = smov 38   ;;  %v1074_v29 = vld [vmem:[%s2640_s21 + $0x10] sm:$0xff]  ;;  %v2388_v44 = vmov 0.0|0.0  }
 0x2ce   :  { %1617 = vst.msk [vmem:[%s1716_s10 + $0x8] sm:$0xff] %vm676_vm5, %v2601_v30  ;;  %v2247_v36 = vpack.c.bf16 %v1314_v33, %v1312_v31  ;;  %s1717_s16 = sld [smem:[%s2842_s0 + %s2386_s14]]   ;;  %v91_v45 = vstv %s1702_s25 }
 0x2cf   :  { %1616 = vst.msk [vmem:[%s1716_s10] sm:$0xff] %vm676_vm5, %v2603_v32  ;;  %s2385_s10 = smov 3   ;;  %92 = vst [vmem:[#allocation4] sm:$0x1] %v91_v45 }
 0x2d0   :  { %2220 = vmatpush1.bf16.msra.mxu0 %v2219_v53  ;;  %v2688_v53 = vshrl.u32 %v1179_v52, 7  ;;  %s1682_s13 = sld [smem:[%s2842_s0 + %s2385_s10]]  }
 0x2d1   :  { %2222 = vmatprep.subr.bf16.mxu0 %v2221_v54 }
 0x2d2   :  { %v1181_v54 = vsub.s32 0, %v2688_v53  ;;  %v1185_v57 = vsub.s32 1, %v2688_v53 }
 0x2d4   :  { %2224 = vmatpush1.bf16.msra.mxu0 %v2223_v59  ;;  %v1182_v61 = vrot.slane %v1177_v56, %v1181_v54  ;;  %v1186_v63 = vrot.slane %v1177_v56, %v1185_v57 }
 0x2d5   :  { %2226 = vmatprep.subr.bf16.mxu0 %v2225_v60 }
 0x2d6   :  { %v973_v22 = vld [vmem:[%s1682_s13 + $0x8] sm:$0xff] }
 0x2d8   :  { %2228 = vmatpush1.bf16.msra.mxu0 %v2227_v3 }
 0x2d9   :  { %2230 = vmatprep.subr.bf16.mxu0 %v2229_v4 }
 0x2dc   :  { %2232 = vmatpush1.bf16.msra.mxu0 %v2231_v9 }
 0x2dd   :  { %2234 = vmatprep.subr.bf16.mxu0 %v2233_v11 }
 0x2e0   :  { %2236 = vmatpush1.bf16.msra.mxu0 %v2235_v18 }
 0x2e1   :  { %2238 = vmatprep.subr.bf16.mxu0 %v2237_v19 }
 0x2e4   :  { %2240 = vmatpush1.bf16.msra.mxu0 %v2239_v24  ;;  %v972_v24 = vld [vmem:[%s1682_s13] sm:$0xff]  ;;  %s2394_s13 = smov 29  }
 0x2e5   :  { %2242 = vmatprep.subr.bf16.mxu0 %v2241_v25  ;;  %s1708_s7 = sld [smem:[%s2842_s0 + %s2394_s13]]  }
 0x2e8   :  { %2244 = vmatpush1.bf16.msra.mxu0 %v2243_v1  ;;  %v1075_v1 = vld [vmem:[%s2640_s21 + $0x18] sm:$0xff] }
 0x2e9   :  { %2246 = vmatprep.subr.bf16.mxu0 %v2245_v2  ;;  %v2189_v33 = vpack.c.bf16 %v1075_v1, %v1074_v29  ;;  %v1442_v29 = vld [vmem:[%s2761_s8 + $0x90] sm:$0xff]  ;;  %v1443_v1 = vld [vmem:[%s2761_s8 + $0x98] sm:$0xff] }
 0x2ec   :  { %2248 = vmatpush1.bf16.msra.mxu0 %v2247_v36  ;;  %v1079_v36 = vld [vmem:[%s2640_s21 + $0x38] sm:$0xff] }
 0x2ed   :  { %2250 = vmatprep.subr.bf16.mxu0 %v2249_v37 }
 0x2f0   :  { %2252 = vmatpush1.bf16.msra.mxu0 %v2251_v42 }
 0x2f1   :  { %2254 = vmatprep.subr.bf16.mxu0 %v2253_v43  ;;  %v1084_v43 = vld [vmem:[%s2640_s21 + $0x60] sm:$0xf] }
 0x2f4   :  { %2256 = vmatpush1.bf16.msra.mxu0 %v2255_v46 }
 0x37c   :  { %v1967_v48 = vpop.f32.mrb[6].mxu0 }
 0x37d   :  { %v663_v49 = vadd.f32 %v1967_v48, %v1736_v47  ;;  %v657_v50 = vpop.f32.mrb[7].mxu0 }
 0x37e   :  { %v658_v51 = vadd.f32 %v1736_v47, %v657_v50 }
 0x37f   :  { %1599 = vst.msk [vmem:[%s1709_s29 + $0x8] sm:$0xff] %vm163_vm1, %v663_v49 }
 0x380   :  { %1598 = vst.msk [vmem:[%s1709_s29] sm:$0xff] %vm163_vm1, %v658_v51  ;;  %s1706_s29 = sld [smem:[%s2842_s0 + %s2390_s26]]  }
 0x386   :  { %v2763_v50 = vld [vmem:[%s1706_s29] sm:$0x3] }
 0x387   :  { %v2768_v51 = vrot.slane %v2763_v50, %v1185_v57  ;;  %v1427_v57 = vld [vmem:[%s2761_s8 + $0x18] sm:$0xff] }
 0x396   :  { %v2030_v58 = vpop.f32.mrb[8].mxu0 }
 0x397   :  { %v963_v59 = vadd.f32 %v2030_v58, %v1748_v55  ;;  %v957_v60 = vpop.f32.mrb[9].mxu0 }
 0x398   :  { %v958_v62 = vadd.f32 %v1748_v55, %v957_v60  ;;  %v1424_v60 = vld [vmem:[%s2761_s8] sm:$0xff] }
 0x399   :  { %v967_v0 = vmul.f32 0.5, %v963_v59  ;;  %v1620_v3 = vmul.f32 1.442695, %v963_v59  ;;  %1625 = vst.msk [vmem:[%s1718_s9 + $0x8] sm:$0xff] %vm676_vm5, %v963_v59 }
 0x39a   :  { %v966_v4 = vmul.f32 0.5, %v958_v62  ;;  %v1618_v5 = vmul.f32 1.442695, %v958_v62  ;;  %1624 = vst.msk [vmem:[%s1718_s9] sm:$0xff] %vm676_vm5, %v958_v62  ;;  %v1261_v6 = vpop.f32.mrb[10].mxu0  ;;  %s2393_s9 = smov 35  }
 0x39b   :  { %v970_v7 = vmul.f32 1.442695, %v967_v0  ;;  %2346 = vpow2.f32 %v1620_v3  ;;  %v1262_v8 = vadd.f32 %v1261_v6, %v1182_v61  ;;  %v1263_v9 = vpop.f32.mrb[11].mxu0  ;;  %s1714_s12 = sld [smem:[%s2842_s0 + %s2393_s9]]  }
 0x39c   :  { %v968_v10 = vmul.f32 1.442695, %v966_v4  ;;  %2348 = vpow2.f32 %v1618_v5  ;;  %v1264_v11 = vadd.f32 %v1263_v9, %v1186_v63  ;;  %v1426_v5 = vld [vmem:[%s2761_s8 + $0x10] sm:$0xff] }
 0x39d   :  { %2350 = vpow2.f32 %v970_v7  ;;  %v1272_v12 = vmax.f32 %v1262_v8, 0.0  ;;  %v2261_v6 = vpack.c.bf16 %v1427_v57, %v1426_v5  ;;  %v1428_v7 = vld [vmem:[%s2761_s8 + $0x20] sm:$0xff]  ;;  %v1429_v8 = vld [vmem:[%s2761_s8 + $0x28] sm:$0xff] }
 0x39e   :  { %2352 = vpow2.f32 %v968_v10  ;;  %v1273_v13 = vmax.f32 %v1264_v11, 0.0  ;;  %v1267_v14 = vpop.f32.mrb[12].mxu0  ;;  %v2264_v9 = vpack.c.bf16 %v1429_v8, %v1428_v7  ;;  %v1430_v10 = vld [vmem:[%s2761_s8 + $0x30] sm:$0xff]  ;;  %v1431_v11 = vld [vmem:[%s2761_s8 + $0x38] sm:$0xff] }
 0x39f   :  { %v1268_v15 = vadd.f32 %v1267_v14, %v1182_v61  ;;  %v1269_v16 = vpop.f32.mrb[13].mxu0  ;;  %v1425_v61 = vld [vmem:[%s2761_s8 + $0x8] sm:$0xff] }
 0x3a0   :  { %v1270_v18 = vadd.f32 %v1269_v16, %v1186_v63  ;;  %1764 = vmatprep.mubr.msk.f32.mxu0 %vm1336_vm7, %v1273_v13  ;;  %v2258_v0 = vpack.c.bf16 %v1425_v61, %v1424_v60  ;;  %v1432_v13 = vld [vmem:[%s2761_s8 + $0x40] sm:$0xff]  ;;  %v1433_v14 = vld [vmem:[%s2761_s8 + $0x48] sm:$0xff]  ;;  %v1434_v16 = vld [vmem:[%s2761_s8 + $0x50] sm:$0xff] }
 0x3a1   :  { %v1274_v19 = vmax.f32 %v1268_v15, 0.0  ;;  %1408 = vmatmul.mubr.f32.vlgmr.msra.gmra.mrb[14].mxu0 %v1272_v12  ;;  %v2267_v12 = vpack.c.bf16 %v1431_v11, %v1430_v10  ;;  %v2270_v15 = vpack.c.bf16 %v1433_v14, %v1432_v13 }
 0x3a2   :  { %v1275_v20 = vmax.f32 %v1270_v18, 0.0  ;;  %v1435_v18 = vld [vmem:[%s2761_s8 + $0x58] sm:$0xff] }
 0x3a4   :  { %1765 = vmatprep.mubr.msk.f32.mxu0 %vm1336_vm7, %v1275_v20  ;;  %v1436_v20 = vld [vmem:[%s2761_s8 + $0x60] sm:$0xff] }
 0x3a5   :  { %v2347_v21 = vpop.eup %2346  ;;  %1414 = vmatmul.mubr.f32.gmra.mrb[16].mxu0 %v1274_v19  ;;  %v2273_v19 = vpack.c.bf16 %v1435_v18, %v1434_v16 }
 0x3a6   :  { %v2349_v23 = vpop.eup %2348  ;;  %1623 = vst.msk [vmem:[%s1717_s16 + $0x8] sm:$0xff] %vm676_vm5, %v2347_v21  ;;  %v1437_v21 = vld [vmem:[%s2761_s8 + $0x68] sm:$0xff] }
 0x3a7   :  { %v2351_v25 = vpop.eup %2350  ;;  %1622 = vst.msk [vmem:[%s1717_s16] sm:$0xff] %vm676_vm5, %v2349_v23  ;;  %v1438_v23 = vld [vmem:[%s2761_s8 + $0x70] sm:$0xff]  ;;  %s2395_s16 = smov 125  }
 0x3a8   :  { %v2353_v26 = vpop.eup %2352  ;;  %v975_v27 = vmul.f32 %v2351_v25, %v973_v22  ;;  %v2276_v22 = vpack.c.bf16 %v1437_v21, %v1436_v20 }
 0x3a9   :  { %v974_v28 = vmul.f32 %v2353_v26, %v972_v24  ;;  %v1439_v24 = vld [vmem:[%s2761_s8 + $0x78] sm:$0xff]  ;;  %v1440_v26 = vld [vmem:[%s2761_s8 + $0x80] sm:$0xff] }
 0x3aa   :  { %v2717_v2 = vadd.f32 %v975_v27, %v2601_v30  ;;  %v2193_v30 = vpack.c.bf16 %v1077_v35, %v1076_v34  ;;  %v2279_v25 = vpack.c.bf16 %v1439_v24, %v1438_v23  ;;  %v1441_v27 = vld [vmem:[%s2761_s8 + $0x88] sm:$0xff]  ;;  %v1444_v34 = vld [vmem:[%s2761_s8 + $0xa0] sm:$0xff] }
 0x3ab   :  { %v2720_v31 = vadd.f32 %v974_v28, %v2603_v32  ;;  %v1078_v32 = vld [vmem:[%s2640_s21 + $0x30] sm:$0xff]  ;;  %v2282_v28 = vpack.c.bf16 %v1441_v27, %v1440_v26  ;;  %v1445_v35 = vld [vmem:[%s2761_s8 + $0xa8] sm:$0xff] }
 0x3ac   :  { %1615 = vst.msk [vmem:[%s1715_s20 + $0x8] sm:$0xff] %vm676_vm5, %v2717_v2  ;;  %v2197_v37 = vpack.c.bf16 %v1079_v36, %v1078_v32  ;;  %v1329_v32 = vrot.slane %v2763_v50, %v1181_v54  ;;  %v1446_v36 = vld [vmem:[%s2761_s8 + $0xb0] sm:$0xff] }
 0x3ad   :  { %2033 = vmatprep.mubr.msk.f32.mxu1 %vm676_vm5, %v2720_v31  ;;  %1614 = vst.msk [vmem:[%s1715_s20] sm:$0xff] %vm676_vm5, %v2720_v31 }
 0x3ae   :  { %2034 = vmatmul.mubr.msk.f32.vlgmr.msra.gmra.mrb[6].mxu1 %vm676_vm5, %v2717_v2 }
 0x3af   :  { %2188 = vmatpush3.bf16.msra.mxu1 %v2656_v17  ;;  %v1083_v17 = vld [vmem:[%s2640_s21 + $0x58] sm:$0xff]  ;;  %s2391_s21 = smov 21  }
 0x3b0   :  { %2190 = vmatprep.subr.bf16.mxu1 %v2189_v33  ;;  %v2205_v42 = vpack.c.bf16 %v1083_v17, %v1082_v41  ;;  %s1700_s3 = sld [smem:[%s2842_s0 + %s2391_s21]]  }
 0x3b3   :  { %2192 = vmatpush3.bf16.msra.mxu1 %v2189_v33  ;;  %v2285_v33 = vpack.c.bf16 %v1443_v1, %v1442_v29 }
 0x3b4   :  { %2194 = vmatprep.subr.bf16.mxu1 %v2193_v30 }
 0x3b6   :  { %v1752_v52 = vld [vmem:[%s1700_s3] ss:$0 sm:$0xff] }
 0x3b7   :  { %2196 = vmatpush3.bf16.msra.mxu1 %v2193_v30  ;;  %v2288_v30 = vpack.c.bf16 %v1445_v35, %v1444_v34 }
 0x3b8   :  { %2198 = vmatprep.subr.bf16.mxu1 %v2197_v37 }
 0x3bb   :  { %2200 = vmatpush3.bf16.msra.mxu1 %v2197_v37  ;;  %v1447_v37 = vld [vmem:[%s2761_s8 + $0xb8] sm:$0xff] }
 0x3bc   :  { %2202 = vmatprep.subr.bf16.mxu1 %v2201_v40  ;;  %v2291_v39 = vpack.c.bf16 %v1447_v37, %v1446_v36 }
 0x3bf   :  { %2204 = vmatpush3.bf16.msra.mxu1 %v2201_v40 }
 0x3c0   :  { %2206 = vmatprep.subr.bf16.mxu1 %v2205_v42 }
 0x3c3   :  { %2208 = vmatpush3.bf16.msra.mxu1 %v2205_v42  ;;  %v1756_v42 = vld [vmem:[#allocation4] ss:$0 sm:$0xff] }
 0x3c4   :  { %2060 = vmatprep.subr.msk.mxu1 %vm170_vm0, %v1084_v43 }
 0x3c7   :  { %2061 = vmatpush3.msk.msra.mxu1 %vm170_vm0, %v1084_v43 }
 0x3c8   :  { %2257 = vmatprep.subr.bf16.mxu1 %v2388_v44 }
 0x474   :  { %v2749_v46 = vpop.f32.mrb[14].mxu0 }
 0x475   :  { %v1411_v47 = vpop.f32.mrb[15].mxu0  ;;  %v1410_v40 = vadd.f32 %v2749_v46, %v1329_v32 }
 0x476   :  { %v1412_v56 = vadd.f32 %v1411_v47, %v2768_v51  ;;  %v1766_v47 = vld [vmem:[%s1708_s7] ss:$0 sm:$0xff] }
 0x477   :  { %v1420_v17 = vmax.f32 %v1410_v40, 0.0 }
 0x478   :  { %v2754_v48 = vpop.f32.mrb[16].mxu0  ;;  %v1421_v3 = vmax.f32 %v1412_v56, 0.0 }
 0x479   :  { %v2756_v49 = vpop.f32.mrb[17].mxu0  ;;  %v1416_v53 = vadd.f32 %v2754_v48, %v1329_v32 }
 0x47a   :  { %v1418_v38 = vadd.f32 %v2756_v49, %v2768_v51 }
 0x47b   :  { %v1422_v54 = vmax.f32 %v1416_v53, 0.0 }
 0x47c   :  { %v1423_v41 = vmax.f32 %v1418_v38, 0.0 }
 0x481   :  { %v2035_v55 = vpop.f32.mrb[6].mxu1 }
 0x482   :  { %v1067_v58 = vadd.f32 %v2035_v55, %v1752_v52  ;;  %v1061_v59 = vpop.f32.mrb[7].mxu1 }
 0x483   :  { %v1062_v62 = vadd.f32 %v1752_v52, %v1061_v59 }
 0x484   :  { %v1071_v4 = vmax.f32 %v1067_v58, 0.0 }
 0x485   :  { %v1070_v63 = vmax.f32 %v1062_v62, 0.0 }
 0x487   :  { %2062 = vmatprep.mubr.msk.f32.mxu1 %vm271_vm2, %v1070_v63 }
 0x488   :  { %2063 = vmatmul.mubr.msk.f32.vlgmr.msra.gmra.mrb[8].mxu1 %vm271_vm2, %v1071_v4 }
 0x489   :  { %2259 = vmatpush1.bf16.msra.mxu1 %v2258_v0  ;;  %1767 = vmatprep.mubr.msk.f32.mxu1 %vm1336_vm7, %v1421_v3 }
 0x48a   :  { %2260 = vmatprep.subr.bf16.mxu1 %v2388_v44 }
 0x48d   :  { %2262 = vmatpush1.bf16.msra.mxu1 %v2261_v6 }
 0x48e   :  { %2263 = vmatprep.subr.bf16.mxu1 %v2388_v44 }
 0x491   :  { %2265 = vmatpush1.bf16.msra.mxu1 %v2264_v9 }
 0x492   :  { %2266 = vmatprep.subr.bf16.mxu1 %v2388_v44 }
 0x495   :  { %2268 = vmatpush1.bf16.msra.mxu1 %v2267_v12 }
 0x496   :  { %2269 = vmatprep.subr.bf16.mxu1 %v2388_v44 }
 0x499   :  { %2271 = vmatpush1.bf16.msra.mxu1 %v2270_v15 }
 0x49a   :  { %2272 = vmatprep.subr.bf16.mxu1 %v2388_v44 }
 0x49d   :  { %2274 = vmatpush1.bf16.msra.mxu1 %v2273_v19 }
 0x49e   :  { %2275 = vmatprep.subr.bf16.mxu1 %v2388_v44 }
 0x4a1   :  { %2277 = vmatpush1.bf16.msra.mxu1 %v2276_v22 }
 0x4a2   :  { %2278 = vmatprep.subr.bf16.mxu1 %v2388_v44 }
 0x4a5   :  { %2280 = vmatpush1.bf16.msra.mxu1 %v2279_v25 }
 0x4a6   :  { %2281 = vmatprep.subr.bf16.mxu1 %v2388_v44 }
 0x4a9   :  { %2283 = vmatpush1.bf16.msra.mxu1 %v2282_v28 }
 0x4aa   :  { %2284 = vmatprep.subr.bf16.mxu1 %v2388_v44 }
 0x4ad   :  { %2286 = vmatpush1.bf16.msra.mxu1 %v2285_v33 }
 0x4ae   :  { %2287 = vmatprep.subr.bf16.mxu1 %v2388_v44 }
 0x4b1   :  { %2289 = vmatpush1.bf16.msra.mxu1 %v2288_v30 }
 0x4b2   :  { %2290 = vmatprep.subr.bf16.mxu1 %v2388_v44 }
 0x4b5   :  { %2292 = vmatpush1.bf16.msra.mxu1 %v2291_v39 }
 0x4b8   :  { %1526 = vmatmul.mubr.f32.vlgmr.msra.gmra.mrb[10].mxu1 %v1420_v17 }
 0x4b9   :  { %1768 = vmatprep.mubr.msk.f32.mxu1 %vm1336_vm7, %v1423_v41 }
 0x4bc   :  { %1531 = vmatmul.mubr.f32.gmra.mrb[12].mxu1 %v1422_v54 }
 0x55b   :  { %v2064_v43 = vpop.f32.mrb[8].mxu1 }
 0x55c   :  { %v1173_v45 = vadd.f32 %v2064_v43, %v1756_v42  ;;  %v1167_v46 = vpop.f32.mrb[9].mxu1 }
 0x55d   :  { %v1168_v44 = vadd.f32 %v1756_v42, %v1167_v46 }
 0x55e   :  { %1613 = vst.msk [vmem:[%s1714_s12 + $0x8] sm:$0xff] %vm676_vm5, %v1173_v45 }
 0x55f   :  { %1612 = vst.msk [vmem:[%s1714_s12] sm:$0xff] %vm676_vm5, %v1168_v44 }
 0x58b   :  { %v1527_v48 = vpop.f32.mrb[10].mxu1 }
 0x58c   :  { %v1528_v49 = vadd.f32 %v1766_v47, %v1527_v48  ;;  %v1529_v50 = vpop.f32.mrb[11].mxu1 }
 0x58e   :  { %1540 = vrot.lane.b32.xlu0 %v1528_v49, %s2395_s16  ;;  %v1536_v56 = vmul.f32 %v1528_v49, %v2720_v31 }
 0x58f   :  { %v1532_v51 = vpop.f32.mrb[12].mxu1 }
 0x590   :  { %v1533_v52 = vadd.f32 %v1766_v47, %v1532_v51  ;;  %v1534_v55 = vpop.f32.mrb[13].mxu1 }
 0x592   :  { %1542 = vrot.lane.b32.xlu0 %v1533_v52, %s2395_s16  ;;  %v1537_v61 = vmul.f32 %v1533_v52, %v2717_v2 }
 0x596   :  { %1562 = vrot.lane.b32.xlu0 %v2720_v31, %s2360_s30 }
 0x600   :  { %v1541_v58 = vpop.permute.xlu0 %1540 }
 0x601   :  { %v1546_v59 = vadd.f32 %v1541_v58, %v1536_v56 }
 0x603   :  { %v1548_v60 = vmax.f32 %v1546_v59, 0.0 }
 0x604   :  { %v1543_v62 = vpop.permute.xlu0 %1542 }
 0x605   :  { %1552 = vrot.lane.b32.xlu1 %v1548_v60, %s2360_s30  ;;  %v1547_v63 = vadd.f32 %v1543_v62, %v1537_v61 }
 0x607   :  { %v1549_v0 = vmax.f32 %v1547_v63, 0.0 }
 0x608   :  { %v1563_v57 = vpop.permute.xlu0 %1562 }
 0x609   :  { %1554 = vrot.lane.b32.xlu1 %v1549_v0, %s2360_s30 }
 0x60d   :  { %1564 = vrot.lane.b32.xlu1 %v2717_v2, %s2360_s30 }
 0x677   :  { %v1553_v3 = vpop.permute.xlu1 %1552 }
 0x678   :  { %v1558_v4 = vmul.f32 %v1553_v3, %v1528_v49 }
 0x67a   :  { %v1560_v5 = vadd.f32 %v1558_v4, %v1541_v58 }
 0x67b   :  { %v1555_v31 = vpop.permute.xlu1 %1554 }
 0x67c   :  { %v1568_v6 = vadd.f32 %v1563_v57, %v1560_v5  ;;  %v1559_v7 = vmul.f32 %v1555_v31, %v1533_v52 }
 0x67e   :  { %v1561_v8 = vadd.f32 %v1559_v7, %v1543_v62  ;;  %v1570_v9 = vmul.f32 %v1568_v6, %v1528_v49 }
 0x67f   :  { %v1565_v10 = vpop.permute.xlu1 %1564 }
 0x680   :  { %v1569_v11 = vadd.f32 %v1565_v10, %v1561_v8  ;;  %v1572_v12 = vadd.f32 %v1570_v9, %v1541_v58 }
 0x682   :  { %v1571_v13 = vmul.f32 %v1569_v11, %v1533_v52  ;;  %v1574_v14 = vmax.f32 %v1572_v12, 0.0 }
 0x684   :  { %1578 = vrot.lane.b32.xlu0 %v1574_v14, %s2360_s30  ;;  %v1573_v15 = vadd.f32 %v1571_v13, %v1543_v62 }
 0x686   :  { %v1575_v16 = vmax.f32 %v1573_v15, 0.0 }
 0x688   :  { %1590 = vrot.lane.b32.xlu0 %v1568_v6, %s2360_s30  ;;  %1580 = vrot.lane.b32.xlu1 %v1575_v16, %s2360_s30 }
 0x68c   :  { %1592 = vrot.lane.b32.xlu1 %v1569_v11, %s2360_s30 }
 0x6f6   :  { %v1579_v2 = vpop.permute.xlu0 %1578 }
 0x6f7   :  { %v1584_v18 = vmul.f32 %v1579_v2, %v1528_v49 }
 0x6f9   :  { %v1586_v19 = vadd.f32 %v1584_v18, %v1541_v58 }
 0x6fa   :  { %v1591_v20 = vpop.permute.xlu0 %1590  ;;  %v1581_v21 = vpop.permute.xlu1 %1580 }
 0x6fb   :  { %v1596_v22 = vadd.f32 %v1591_v20, %v1586_v19  ;;  %v1585_v23 = vmul.f32 %v1581_v21, %v1533_v52 }
 0x6fd   :  { %1628 = vrot.lane.b32.xlu0 %v1596_v22, %s2396_s17  ;;  %v1587_v24 = vadd.f32 %v1585_v23, %v1543_v62 }
 0x6fe   :  { %v1593_v25 = vpop.permute.xlu1 %1592 }
 0x6ff   :  { %v1597_v26 = vadd.f32 %v1593_v25, %v1587_v24 }
 0x701   :  { %1630 = vrot.lane.b32.xlu1 %v1597_v26, %s2396_s17 }
 0x76f   :  { %v1629_v27 = vpop.permute.xlu0 %1628 }
 0x770   :  { %1634 = vst.msk [vmem:[%s1719_s22] sm:$0xff] %vm676_vm5, %v1629_v27 }
 0x773   :  { %v1631_v28 = vpop.permute.xlu1 %1630 }
 0x774   :  { %1635 = vst.msk [vmem:[%s1719_s22 + $0x8] sm:$0xff] %vm676_vm5, %v1631_v28 }

</bundles_post_ra>
